<compile_context>
chip_gen: v6e
topology: v6e:2x2x1
jax: 0.10.0
libtpu: 0.0.40
codegen_flags: <defaults>
</compile_context>

<pallas_src>
import numpy as np

import jax
import jax.numpy as jnp
from jax.experimental import pallas as pl
from jax.experimental.pallas import tpu as pltpu


# ----------------------------------------------------------------------------
# Fused forward kernel
# ----------------------------------------------------------------------------
def _mnist_fused_kernel(
    x_ref,      # (N, 28, 28)   input image (channel dim of 1 squeezed)
    m1_ref,     # (5, 28, 192)  conv1 banded matrices, one per kernel row dy
    b1_ref,     # (1, 192)      conv1 bias tiled to the conv1 lane layout
    s1e_ref,    # (N*12, N*24)  0/1 selection: even rows of conv1 output
    s1o_ref,    # (N*12, N*24)  0/1 selection: odd rows of conv1 output
    m2_ref,     # (5, 96, 128)  conv2 banded matrices
    b2_ref,     # (1, 128)      conv2 bias tiled to the conv2 lane layout
    g_ref,      # (1, 16)       BN gamma
    bt_ref,     # (1, 16)       BN beta
    gmat_ref,   # (256, 16)     per-channel group-average matrix (1/16 entries)
    tmat_ref,   # (16, 256)     per-channel tile-back matrix (0/1 entries)
    w1_ref,     # (256, 120)    fc1 weights, rows permuted to the feature lane order
    fb1_ref,    # (1, 120)
    w2_ref,     # (120, 10)     fc2 weights (transposed)
    fb2_ref,    # (1, 10)
    o_ref,      # (N, 10)       output logits
    acc1_ref,   # scratch (N*24, 192)
    p1_ref,     # scratch (N*12, 96)
    acc2_ref,   # scratch (N*8, 128)
    v2_ref,     # scratch (N*8, 64)
    feat_ref,   # scratch (N, 256)
):
    n = x_ref.shape[0]
    f32 = jnp.float32

    # ---------------- conv1 (1->8, k=5) + bias + ReLU ----------------
    # acc[row=(n,y), lane=parity*96 + j*8 + co] = conv1 output at x = 2j+parity.
    acc = jnp.zeros((n * 24, 192), f32)
    for dy in range(5):
        band = jnp.concatenate(
            [x_ref[i, pl.ds(dy, 24), :] for i in range(n)], axis=0)   # (N*24, 28)
        acc = acc + jnp.dot(band, m1_ref[dy], preferred_element_type=f32)
    acc = jnp.maximum(acc + b1_ref[...], 0.0)
    acc1_ref[...] = acc

    # maxpool W: even-x / odd-x phases live in the two lane halves.
    m = jnp.maximum(acc1_ref[:, pl.ds(0, 96)], acc1_ref[:, pl.ds(96, 96)])  # (N*24, 96)
    # maxpool H: select rows 2i / 2i+1 per sample with 0/1 matmuls, then max.
    p1 = jnp.maximum(
        jnp.dot(s1e_ref[...], m, preferred_element_type=f32),
        jnp.dot(s1o_ref[...], m, preferred_element_type=f32))               # (N*12, 96)
    p1_ref[...] = p1
    # p1 layout: row = (n, i) with i in [0,12); lane = j*8 + ci  (NHWC (n,i,j,ci))

    # ---------------- conv2 (8->16, k=5) + bias + ReLU ----------------
    acc2 = jnp.zeros((n * 8, 128), f32)
    for dy in range(5):
        band = jnp.concatenate(
            [p1_ref[pl.ds(i * 12 + dy, 8), :] for i in range(n)], axis=0)   # (N*8, 96)
        acc2 = acc2 + jnp.dot(band, m2_ref[dy], preferred_element_type=f32)
    acc2 = jnp.maximum(acc2 + b2_ref[...], 0.0)
    acc2_ref[...] = acc2

    # maxpool W (lane halves are even/odd output columns).
    v2_ref[...] = jnp.maximum(acc2_ref[:, pl.ds(0, 64)],
                              acc2_ref[:, pl.ds(64, 64)])                    # (N*8, 64)

    # maxpool H + flatten to (N, 256); feature lane L = h*64 + w*16 + c.
    for i in range(n):
        for hh in range(4):
            row = jnp.maximum(v2_ref[pl.ds(i * 8 + 2 * hh, 1), :],
                              v2_ref[pl.ds(i * 8 + 2 * hh + 1, 1), :])       # (1, 64)
            feat_ref[pl.ds(i, 1), pl.ds(hh * 64, 64)] = row
    feat = feat_ref[...]                                                     # (N, 256)

    # ---------------- BatchNorm2d (training-mode batch statistics) ----------------
    # Channel c occupies the 16 lane groups {g*16 + c}; group-average with gmat,
    # tile back with tmat (both exact 0/(1/16) matrices).
    mean_c = jnp.dot(jnp.mean(feat, axis=0, keepdims=True), gmat_ref[...],
                     preferred_element_type=f32)                             # (1, 16)
    mean_l = jnp.dot(mean_c, tmat_ref[...], preferred_element_type=f32)      # (1, 256)
    cen = feat - mean_l
    var_c = jnp.dot(jnp.mean(cen * cen, axis=0, keepdims=True), gmat_ref[...],
                    preferred_element_type=f32)                              # (1, 16)
    inv_c = jax.lax.rsqrt(var_c + 1e-5)
    scale_l = jnp.dot(g_ref[...] * inv_c, tmat_ref[...], preferred_element_type=f32)
    shift_l = jnp.dot(bt_ref[...], tmat_ref[...], preferred_element_type=f32)
    xn = cen * scale_l + shift_l                                             # (N, 256)

    # ---------------- fc1 + ReLU, fc2 + ReLU ----------------
    h1 = jnp.maximum(jnp.dot(xn, w1_ref[...], preferred_element_type=f32)
                     + fb1_ref[...], 0.0)                                    # (N, 120)
    out = jnp.maximum(jnp.dot(h1, w2_ref[...], preferred_element_type=f32)
                      + fb2_ref[...], 0.0)                                   # (N, 10)
    o_ref[...] = out.astype(o_ref.dtype)


def mnist_forward(x_nchw, prep):
    n = x_nchw.shape[0]
    x3 = x_nchw.reshape(n, 28, 28).astype(jnp.float32)
    vmem = pl.BlockSpec(memory_space=pltpu.MemorySpace.VMEM)
    return pl.pallas_call(
        _mnist_fused_kernel,
        out_shape=jax.ShapeDtypeStruct((n, 10), jnp.float32),
        in_specs=[vmem] * 15,
        out_specs=vmem,
        scratch_shapes=[
            pltpu.VMEM((n * 24, 192), jnp.float32),
            pltpu.VMEM((n * 12, 96), jnp.float32),
            pltpu.VMEM((n * 8, 128), jnp.float32),
            pltpu.VMEM((n * 8, 64), jnp.float32),
            pltpu.VMEM((n, 256), jnp.float32),
        ],
    )(x3, prep["m1"], prep["b1t"], prep["s1e"], prep["s1o"], prep["m2"],
      prep["b2t"], prep["bn_g"], prep["bn_b"], prep["gmat"], prep["tmat"],
      prep["fc1_w"], prep["fc1_b"], prep["fc2_w"], prep["fc2_b"])


# ----------------------------------------------------------------------------
# One-time weight layout preparation (outside jit)
# ----------------------------------------------------------------------------
def prepare_params(params, n):
    conv1_w = np.asarray(params["conv1_w"], np.float32)   # (8, 1, 5, 5)
    conv1_b = np.asarray(params["conv1_b"], np.float32)
    conv2_w = np.asarray(params["conv2_w"], np.float32)   # (16, 8, 5, 5)
    conv2_b = np.asarray(params["conv2_b"], np.float32)
    fc1_w = np.asarray(params["fc1_w"], np.float32)        # (120, 256)
    fc1_b = np.asarray(params["fc1_b"], np.float32)
    fc2_w = np.asarray(params["fc2_w"], np.float32)        # (10, 120)
    fc2_b = np.asarray(params["fc2_b"], np.float32)

    # conv1 banded matrices: band_dy (N*24, 28) @ m1[dy] (28, 192), summed over dy.
    # Output lane = parity*96 + j*8 + co for output column x = 2j + parity.
    m1 = np.zeros((5, 28, 192), np.float32)
    b1t = np.zeros((1, 192), np.float32)
    for parity in range(2):
        for j in range(12):
            x_out = 2 * j + parity
            for co in range(8):
                lane = parity * 96 + j * 8 + co
                b1t[0, lane] = conv1_b[co]
                for dy in range(5):
                    for dx in range(5):
                        m1[dy, x_out + dx, lane] = conv1_w[co, 0, dy, dx]

    # Vertical-pool selection matrices for conv1 (rows 2i / 2i+1 per sample block).
    s1e = np.zeros((n * 12, n * 24), np.float32)
    s1o = np.zeros((n * 12, n * 24), np.float32)
    for b in range(n):
        for i in range(12):
            s1e[b * 12 + i, b * 24 + 2 * i] = 1.0
            s1o[b * 12 + i, b * 24 + 2 * i + 1] = 1.0

    # conv2 banded matrices: band_dy (N*8, 96) @ m2[dy] (96, 128), summed over dy.
    # Input lane = j*8 + ci ; output lane = parity*64 + jj*16 + co for x = 2jj+parity.
    m2 = np.zeros((5, 96, 128), np.float32)
    b2t = np.zeros((1, 128), np.float32)
    for parity in range(2):
        for jj in range(4):
            x_out = 2 * jj + parity
            for co in range(16):
                out_lane = parity * 64 + jj * 16 + co
                b2t[0, out_lane] = conv2_b[co]
                for dy in range(5):
                    for dx in range(5):
                        j = x_out + dx
                        for ci in range(8):
                            m2[dy, j * 8 + ci, out_lane] = conv2_w[co, ci, dy, dx]

    # BN per-channel group-average / tile-back matrices (feature lane L = h*64+w*16+c).
    gmat = np.zeros((256, 16), np.float32)
    tmat = np.zeros((16, 256), np.float32)
    for L in range(256):
        c = L % 16
        gmat[L, c] = 1.0 / 16.0
        tmat[c, L] = 1.0

    # fc1 rows permuted from PyTorch NCHW flatten order (c*16 + h*4 + w) to lane order.
    perm = np.zeros(256, np.int32)
    for hh in range(4):
        for ww in range(4):
            for c in range(16):
                perm[hh * 64 + ww * 16 + c] = c * 16 + hh * 4 + ww
    w1p = fc1_w[:, perm].T.copy()                           # (256, 120)

    return {
        "m1": jnp.asarray(m1), "b1t": jnp.asarray(b1t),
        "s1e": jnp.asarray(s1e), "s1o": jnp.asarray(s1o),
        "m2": jnp.asarray(m2), "b2t": jnp.asarray(b2t),
        "bn_g": jnp.asarray(np.asarray(params["bn_g"], np.float32).reshape(1, 16)),
        "bn_b": jnp.asarray(np.asarray(params["bn_b"], np.float32).reshape(1, 16)),
        "gmat": jnp.asarray(gmat), "tmat": jnp.asarray(tmat),
        "fc1_w": jnp.asarray(w1p),
        "fc1_b": jnp.asarray(fc1_b.reshape(1, 120)),
        "fc2_w": jnp.asarray(fc2_w.T.copy()),
        "fc2_b": jnp.asarray(fc2_b.reshape(1, 10)),
    }


# ----------------------------------------------------------------------------
# Pure-JAX reference (correctness check only)
# ----------------------------------------------------------------------------
def reference_forward(x, params):
    prec = jax.lax.Precision.HIGHEST

    def conv(inp, w, b):
        out = jax.lax.conv_general_dilated(
            inp, w, window_strides=(1, 1), padding="VALID",
            dimension_numbers=("NCHW", "OIHW", "NCHW"), precision=prec)
        return out + b.reshape(1, -1, 1, 1)

    def pool(t):
        nn, cc, hh, ww = t.shape
        return t.reshape(nn, cc, hh // 2, 2, ww // 2, 2).max(axis=(3, 5))

    a = pool(jax.nn.relu(conv(x, params["conv1_w"], params["conv1_b"])))
    a = pool(jax.nn.relu(conv(a, params["conv2_w"], params["conv2_b"])))
    mean = a.mean(axis=(0, 2, 3), keepdims=True)
    var = ((a - mean) ** 2).mean(axis=(0, 2, 3), keepdims=True)
    a = (a - mean) * jax.lax.rsqrt(var + 1e-5)
    a = a * params["bn_g"].reshape(1, -1, 1, 1) + params["bn_b"].reshape(1, -1, 1, 1)
    f = a.reshape(a.shape[0], -1)
    h1 = jax.nn.relu(jnp.dot(f, params["fc1_w"].T, precision=prec) + params["fc1_b"])
    return jax.nn.relu(jnp.dot(h1, params["fc2_w"].T, precision=prec) + params["fc2_b"])


def init_params(key):
    ks = jax.random.split(key, 8)
    sd = 0.1
    return {
        "conv1_w": sd * jax.random.normal(ks[0], (8, 1, 5, 5), jnp.float32),
        "conv1_b": sd * jax.random.normal(ks[1], (8,), jnp.float32),
        "conv2_w": sd * jax.random.normal(ks[2], (16, 8, 5, 5), jnp.float32),
        "conv2_b": sd * jax.random.normal(ks[3], (16,), jnp.float32),
        "bn_g": jnp.ones((16,), jnp.float32),     # PyTorch BatchNorm2d init
        "bn_b": jnp.zeros((16,), jnp.float32),
        "fc1_w": sd * jax.random.normal(ks[4], (120, 256), jnp.float32),
        "fc1_b": sd * jax.random.normal(ks[5], (120,), jnp.float32),
        "fc2_w": sd * jax.random.normal(ks[6], (10, 120), jnp.float32),
        "fc2_b": sd * jax.random.normal(ks[7], (10,), jnp.float32),
    }


if __name__ == "__main__":
    key = jax.random.PRNGKey(0)
    pkey, xkey = jax.random.split(key)
    params = init_params(pkey)

    n = 2
    prep = prepare_params(params, n)          # one-time weight layout prep, outside jit

    # MNIST-shaped input (fc1 in_features = 16*4*4 implies 1x28x28 images).
    x = jax.random.normal(xkey, (n, 1, 28, 28), jnp.float32)

    fwd = jax.jit(mnist_forward)
    out = jax.block_until_ready(fwd(x, prep))

    ref = jax.block_until_ready(reference_forward(x, params))

    assert out.shape == (n, 10), out.shape
    assert bool(jnp.all(jnp.isfinite(out)))
    assert bool(jnp.all(out >= 0.0))          # final ReLU
    np.testing.assert_allclose(np.asarray(out), np.asarray(ref), rtol=5e-2, atol=5e-2)
    print("KERNEL_OK")
</pallas_src>

<mosaic_0001>
module attributes {stable_mosaic.version = 11 : i64} {
  func.func @_mnist_fused_kernel(%arg0: memref<2x28x28xf32, #tpu.memory_space<vmem>>, %arg1: memref<5x28x192xf32, #tpu.memory_space<vmem>>, %arg2: memref<1x192xf32, #tpu.memory_space<vmem>>, %arg3: memref<24x48xf32, #tpu.memory_space<vmem>>, %arg4: memref<24x48xf32, #tpu.memory_space<vmem>>, %arg5: memref<5x96x128xf32, #tpu.memory_space<vmem>>, %arg6: memref<1x128xf32, #tpu.memory_space<vmem>>, %arg7: memref<1x16xf32, #tpu.memory_space<vmem>>, %arg8: memref<1x16xf32, #tpu.memory_space<vmem>>, %arg9: memref<256x16xf32, #tpu.memory_space<vmem>>, %arg10: memref<16x256xf32, #tpu.memory_space<vmem>>, %arg11: memref<256x120xf32, #tpu.memory_space<vmem>>, %arg12: memref<1x120xf32, #tpu.memory_space<vmem>>, %arg13: memref<120x10xf32, #tpu.memory_space<vmem>>, %arg14: memref<1x10xf32, #tpu.memory_space<vmem>>, %arg15: memref<2x10xf32, #tpu.memory_space<vmem>>, %arg16: memref<48x192xf32, #tpu.memory_space<vmem>>, %arg17: memref<24x96xf32, #tpu.memory_space<vmem>>, %arg18: memref<16x128xf32, #tpu.memory_space<vmem>>, %arg19: memref<16x64xf32, #tpu.memory_space<vmem>>, %arg20: memref<2x256xf32, #tpu.memory_space<vmem>>) attributes {dimension_semantics = [], scalar_prefetch = 0 : i64, scratch_operands = 5 : i64, tpu.core_type = #tpu.core_type<tc>} {
    %cst = arith.constant 0.000000e+00 : f32
    %0 = vector.broadcast %cst : f32 to vector<48x192xf32>
    %c0 = arith.constant 0 : index
    %c0_0 = arith.constant 0 : index
    %c0_1 = arith.constant 0 : index
    %1 = vector.load %arg0[%c0, %c0_0, %c0_1] : memref<2x28x28xf32, #tpu.memory_space<vmem>>, vector<1x24x28xf32>
    %2 = vector.shape_cast %1 : vector<1x24x28xf32> to vector<24x28xf32>
    %c1 = arith.constant 1 : index
    %c0_2 = arith.constant 0 : index
    %c0_3 = arith.constant 0 : index
    %3 = vector.load %arg0[%c1, %c0_2, %c0_3] : memref<2x28x28xf32, #tpu.memory_space<vmem>>, vector<1x24x28xf32>
    %4 = vector.shape_cast %3 : vector<1x24x28xf32> to vector<24x28xf32>
    %5 = tpu.concatenate %2, %4 in 0 : vector<24x28xf32>, vector<24x28xf32> -> vector<48x28xf32>
    %c0_4 = arith.constant 0 : index
    %c0_5 = arith.constant 0 : index
    %c0_6 = arith.constant 0 : index
    %6 = vector.load %arg1[%c0_4, %c0_5, %c0_6] : memref<5x28x192xf32, #tpu.memory_space<vmem>>, vector<1x28x192xf32>
    %7 = vector.shape_cast %6 : vector<1x28x192xf32> to vector<28x192xf32>
    %cst_7 = arith.constant dense<0.000000e+00> : vector<48x192xf32>
    %8 = tpu.matmul %5, %7, %cst_7 {dimension_numbers = #tpu.dot_dimension_numbers<[1], [0], [0], [1], [0, 0, 1, 1], [], []>} : vector<48x28xf32>, vector<28x192xf32>, vector<48x192xf32> -> vector<48x192xf32>
    %9 = arith.addf %0, %8 : vector<48x192xf32>
    %c0_8 = arith.constant 0 : index
    %c1_9 = arith.constant 1 : index
    %c0_10 = arith.constant 0 : index
    %10 = vector.load %arg0[%c0_8, %c1_9, %c0_10] : memref<2x28x28xf32, #tpu.memory_space<vmem>>, vector<1x24x28xf32>
    %11 = vector.shape_cast %10 : vector<1x24x28xf32> to vector<24x28xf32>
    %c1_11 = arith.constant 1 : index
    %c1_12 = arith.constant 1 : index
    %c0_13 = arith.constant 0 : index
    %12 = vector.load %arg0[%c1_11, %c1_12, %c0_13] : memref<2x28x28xf32, #tpu.memory_space<vmem>>, vector<1x24x28xf32>
    %13 = vector.shape_cast %12 : vector<1x24x28xf32> to vector<24x28xf32>
    %14 = tpu.concatenate %11, %13 in 0 : vector<24x28xf32>, vector<24x28xf32> -> vector<48x28xf32>
    %c1_14 = arith.constant 1 : index
    %c0_15 = arith.constant 0 : index
    %c0_16 = arith.constant 0 : index
    %15 = vector.load %arg1[%c1_14, %c0_15, %c0_16] : memref<5x28x192xf32, #tpu.memory_space<vmem>>, vector<1x28x192xf32>
    %16 = vector.shape_cast %15 : vector<1x28x192xf32> to vector<28x192xf32>
    %cst_17 = arith.constant dense<0.000000e+00> : vector<48x192xf32>
    %17 = tpu.matmul %14, %16, %cst_17 {dimension_numbers = #tpu.dot_dimension_numbers<[1], [0], [0], [1], [0, 0, 1, 1], [], []>} : vector<48x28xf32>, vector<28x192xf32>, vector<48x192xf32> -> vector<48x192xf32>
    %18 = arith.addf %9, %17 : vector<48x192xf32>
    %c0_18 = arith.constant 0 : index
    %c2 = arith.constant 2 : index
    %c0_19 = arith.constant 0 : index
    %19 = vector.load %arg0[%c0_18, %c2, %c0_19] : memref<2x28x28xf32, #tpu.memory_space<vmem>>, vector<1x24x28xf32>
    %20 = vector.shape_cast %19 : vector<1x24x28xf32> to vector<24x28xf32>
    %c1_20 = arith.constant 1 : index
    %c2_21 = arith.constant 2 : index
    %c0_22 = arith.constant 0 : index
    %21 = vector.load %arg0[%c1_20, %c2_21, %c0_22] : memref<2x28x28xf32, #tpu.memory_space<vmem>>, vector<1x24x28xf32>
    %22 = vector.shape_cast %21 : vector<1x24x28xf32> to vector<24x28xf32>
    %23 = tpu.concatenate %20, %22 in 0 : vector<24x28xf32>, vector<24x28xf32> -> vector<48x28xf32>
    %c2_23 = arith.constant 2 : index
    %c0_24 = arith.constant 0 : index
    %c0_25 = arith.constant 0 : index
    %24 = vector.load %arg1[%c2_23, %c0_24, %c0_25] : memref<5x28x192xf32, #tpu.memory_space<vmem>>, vector<1x28x192xf32>
    %25 = vector.shape_cast %24 : vector<1x28x192xf32> to vector<28x192xf32>
    %cst_26 = arith.constant dense<0.000000e+00> : vector<48x192xf32>
    %26 = tpu.matmul %23, %25, %cst_26 {dimension_numbers = #tpu.dot_dimension_numbers<[1], [0], [0], [1], [0, 0, 1, 1], [], []>} : vector<48x28xf32>, vector<28x192xf32>, vector<48x192xf32> -> vector<48x192xf32>
    %27 = arith.addf %18, %26 : vector<48x192xf32>
    %c0_27 = arith.constant 0 : index
    %c3 = arith.constant 3 : index
    %c0_28 = arith.constant 0 : index
    %28 = vector.load %arg0[%c0_27, %c3, %c0_28] : memref<2x28x28xf32, #tpu.memory_space<vmem>>, vector<1x24x28xf32>
    %29 = vector.shape_cast %28 : vector<1x24x28xf32> to vector<24x28xf32>
    %c1_29 = arith.constant 1 : index
    %c3_30 = arith.constant 3 : index
    %c0_31 = arith.constant 0 : index
    %30 = vector.load %arg0[%c1_29, %c3_30, %c0_31] : memref<2x28x28xf32, #tpu.memory_space<vmem>>, vector<1x24x28xf32>
    %31 = vector.shape_cast %30 : vector<1x24x28xf32> to vector<24x28xf32>
    %32 = tpu.concatenate %29, %31 in 0 : vector<24x28xf32>, vector<24x28xf32> -> vector<48x28xf32>
    %c3_32 = arith.constant 3 : index
    %c0_33 = arith.constant 0 : index
    %c0_34 = arith.constant 0 : index
    %33 = vector.load %arg1[%c3_32, %c0_33, %c0_34] : memref<5x28x192xf32, #tpu.memory_space<vmem>>, vector<1x28x192xf32>
    %34 = vector.shape_cast %33 : vector<1x28x192xf32> to vector<28x192xf32>
    %cst_35 = arith.constant dense<0.000000e+00> : vector<48x192xf32>
    %35 = tpu.matmul %32, %34, %cst_35 {dimension_numbers = #tpu.dot_dimension_numbers<[1], [0], [0], [1], [0, 0, 1, 1], [], []>} : vector<48x28xf32>, vector<28x192xf32>, vector<48x192xf32> -> vector<48x192xf32>
    %36 = arith.addf %27, %35 : vector<48x192xf32>
    %c0_36 = arith.constant 0 : index
    %c4 = arith.constant 4 : index
    %c0_37 = arith.constant 0 : index
    %37 = vector.load %arg0[%c0_36, %c4, %c0_37] : memref<2x28x28xf32, #tpu.memory_space<vmem>>, vector<1x24x28xf32>
    %38 = vector.shape_cast %37 : vector<1x24x28xf32> to vector<24x28xf32>
    %c1_38 = arith.constant 1 : index
    %c4_39 = arith.constant 4 : index
    %c0_40 = arith.constant 0 : index
    %39 = vector.load %arg0[%c1_38, %c4_39, %c0_40] : memref<2x28x28xf32, #tpu.memory_space<vmem>>, vector<1x24x28xf32>
    %40 = vector.shape_cast %39 : vector<1x24x28xf32> to vector<24x28xf32>
    %41 = tpu.concatenate %38, %40 in 0 : vector<24x28xf32>, vector<24x28xf32> -> vector<48x28xf32>
    %c4_41 = arith.constant 4 : index
    %c0_42 = arith.constant 0 : index
    %c0_43 = arith.constant 0 : index
    %42 = vector.load %arg1[%c4_41, %c0_42, %c0_43] : memref<5x28x192xf32, #tpu.memory_space<vmem>>, vector<1x28x192xf32>
    %43 = vector.shape_cast %42 : vector<1x28x192xf32> to vector<28x192xf32>
    %cst_44 = arith.constant dense<0.000000e+00> : vector<48x192xf32>
    %44 = tpu.matmul %41, %43, %cst_44 {dimension_numbers = #tpu.dot_dimension_numbers<[1], [0], [0], [1], [0, 0, 1, 1], [], []>} : vector<48x28xf32>, vector<28x192xf32>, vector<48x192xf32> -> vector<48x192xf32>
    %45 = arith.addf %36, %44 : vector<48x192xf32>
    %c0_45 = arith.constant 0 : index
    %c0_46 = arith.constant 0 : index
    %46 = vector.load %arg2[%c0_45, %c0_46] : memref<1x192xf32, #tpu.memory_space<vmem>>, vector<1x192xf32>
    %47 = vector.broadcast %46 : vector<1x192xf32> to vector<48x192xf32>
    %48 = arith.addf %45, %47 : vector<48x192xf32>
    %cst_47 = arith.constant 0.000000e+00 : f32
    %49 = vector.broadcast %cst_47 : f32 to vector<48x192xf32>
    %50 = arith.maximumf %48, %49 : vector<48x192xf32>
    %c0_48 = arith.constant 0 : index
    %c0_49 = arith.constant 0 : index
    %51 = vector.load %arg16[%c0_48, %c0_49] : memref<48x192xf32, #tpu.memory_space<vmem>>, vector<48x192xf32>
    tpu.vector_store %arg16[%c0_48, %c0_49], %50 {strides = array<i32>} : memref<48x192xf32, #tpu.memory_space<vmem>>, vector<48x192xf32>,
    %c0_50 = arith.constant 0 : index
    %c0_51 = arith.constant 0 : index
    %52 = vector.load %arg16[%c0_50, %c0_51] : memref<48x192xf32, #tpu.memory_space<vmem>>, vector<48x96xf32>
    %c0_52 = arith.constant 0 : index
    %c96 = arith.constant 96 : index
    %53 = vector.load %arg16[%c0_52, %c96] : memref<48x192xf32, #tpu.memory_space<vmem>>, vector<48x96xf32>
    %54 = arith.maximumf %52, %53 : vector<48x96xf32>
    %c0_53 = arith.constant 0 : index
    %c0_54 = arith.constant 0 : index
    %55 = vector.load %arg3[%c0_53, %c0_54] : memref<24x48xf32, #tpu.memory_space<vmem>>, vector<24x48xf32>
    %cst_55 = arith.constant dense<0.000000e+00> : vector<24x96xf32>
    %56 = tpu.matmul %55, %54, %cst_55 {dimension_numbers = #tpu.dot_dimension_numbers<[1], [0], [0], [1], [0, 0, 1, 1], [], []>} : vector<24x48xf32>, vector<48x96xf32>, vector<24x96xf32> -> vector<24x96xf32>
    %c0_56 = arith.constant 0 : index
    %c0_57 = arith.constant 0 : index
    %57 = vector.load %arg4[%c0_56, %c0_57] : memref<24x48xf32, #tpu.memory_space<vmem>>, vector<24x48xf32>
    %cst_58 = arith.constant dense<0.000000e+00> : vector<24x96xf32>
    %58 = tpu.matmul %57, %54, %cst_58 {dimension_numbers = #tpu.dot_dimension_numbers<[1], [0], [0], [1], [0, 0, 1, 1], [], []>} : vector<24x48xf32>, vector<48x96xf32>, vector<24x96xf32> -> vector<24x96xf32>
    %59 = arith.maximumf %56, %58 : vector<24x96xf32>
    %c0_59 = arith.constant 0 : index
    %c0_60 = arith.constant 0 : index
    %60 = vector.load %arg17[%c0_59, %c0_60] : memref<24x96xf32, #tpu.memory_space<vmem>>, vector<24x96xf32>
    tpu.vector_store %arg17[%c0_59, %c0_60], %59 {strides = array<i32>} : memref<24x96xf32, #tpu.memory_space<vmem>>, vector<24x96xf32>,
    %cst_61 = arith.constant 0.000000e+00 : f32
    %61 = vector.broadcast %cst_61 : f32 to vector<16x128xf32>
    %c0_62 = arith.constant 0 : index
    %c0_63 = arith.constant 0 : index
    %62 = vector.load %arg17[%c0_62, %c0_63] : memref<24x96xf32, #tpu.memory_space<vmem>>, vector<8x96xf32>
    %c12 = arith.constant 12 : index
    %c0_64 = arith.constant 0 : index
    %63 = vector.load %arg17[%c12, %c0_64] : memref<24x96xf32, #tpu.memory_space<vmem>>, vector<8x96xf32>
    %64 = tpu.concatenate %62, %63 in 0 : vector<8x96xf32>, vector<8x96xf32> -> vector<16x96xf32>
    %c0_65 = arith.constant 0 : index
    %c0_66 = arith.constant 0 : index
    %c0_67 = arith.constant 0 : index
    %65 = vector.load %arg5[%c0_65, %c0_66, %c0_67] : memref<5x96x128xf32, #tpu.memory_space<vmem>>, vector<1x96x128xf32>
    %66 = vector.shape_cast %65 : vector<1x96x128xf32> to vector<96x128xf32>
    %cst_68 = arith.constant dense<0.000000e+00> : vector<16x128xf32>
    %67 = tpu.matmul %64, %66, %cst_68 {dimension_numbers = #tpu.dot_dimension_numbers<[1], [0], [0], [1], [0, 0, 1, 1], [], []>} : vector<16x96xf32>, vector<96x128xf32>, vector<16x128xf32> -> vector<16x128xf32>
    %68 = arith.addf %61, %67 : vector<16x128xf32>
    %c1_69 = arith.constant 1 : index
    %c0_70 = arith.constant 0 : index
    %69 = vector.load %arg17[%c1_69, %c0_70] : memref<24x96xf32, #tpu.memory_space<vmem>>, vector<8x96xf32>
    %c13 = arith.constant 13 : index
    %c0_71 = arith.constant 0 : index
    %70 = vector.load %arg17[%c13, %c0_71] : memref<24x96xf32, #tpu.memory_space<vmem>>, vector<8x96xf32>
    %71 = tpu.concatenate %69, %70 in 0 : vector<8x96xf32>, vector<8x96xf32> -> vector<16x96xf32>
    %c1_72 = arith.constant 1 : index
    %c0_73 = arith.constant 0 : index
    %c0_74 = arith.constant 0 : index
    %72 = vector.load %arg5[%c1_72, %c0_73, %c0_74] : memref<5x96x128xf32, #tpu.memory_space<vmem>>, vector<1x96x128xf32>
    %73 = vector.shape_cast %72 : vector<1x96x128xf32> to vector<96x128xf32>
    %cst_75 = arith.constant dense<0.000000e+00> : vector<16x128xf32>
    %74 = tpu.matmul %71, %73, %cst_75 {dimension_numbers = #tpu.dot_dimension_numbers<[1], [0], [0], [1], [0, 0, 1, 1], [], []>} : vector<16x96xf32>, vector<96x128xf32>, vector<16x128xf32> -> vector<16x128xf32>
    %75 = arith.addf %68, %74 : vector<16x128xf32>
    %c2_76 = arith.constant 2 : index
    %c0_77 = arith.constant 0 : index
    %76 = vector.load %arg17[%c2_76, %c0_77] : memref<24x96xf32, #tpu.memory_space<vmem>>, vector<8x96xf32>
    %c14 = arith.constant 14 : index
    %c0_78 = arith.constant 0 : index
    %77 = vector.load %arg17[%c14, %c0_78] : memref<24x96xf32, #tpu.memory_space<vmem>>, vector<8x96xf32>
    %78 = tpu.concatenate %76, %77 in 0 : vector<8x96xf32>, vector<8x96xf32> -> vector<16x96xf32>
    %c2_79 = arith.constant 2 : index
    %c0_80 = arith.constant 0 : index
    %c0_81 = arith.constant 0 : index
    %79 = vector.load %arg5[%c2_79, %c0_80, %c0_81] : memref<5x96x128xf32, #tpu.memory_space<vmem>>, vector<1x96x128xf32>
    %80 = vector.shape_cast %79 : vector<1x96x128xf32> to vector<96x128xf32>
    %cst_82 = arith.constant dense<0.000000e+00> : vector<16x128xf32>
    %81 = tpu.matmul %78, %80, %cst_82 {dimension_numbers = #tpu.dot_dimension_numbers<[1], [0], [0], [1], [0, 0, 1, 1], [], []>} : vector<16x96xf32>, vector<96x128xf32>, vector<16x128xf32> -> vector<16x128xf32>
    %82 = arith.addf %75, %81 : vector<16x128xf32>
    %c3_83 = arith.constant 3 : index
    %c0_84 = arith.constant 0 : index
    %83 = vector.load %arg17[%c3_83, %c0_84] : memref<24x96xf32, #tpu.memory_space<vmem>>, vector<8x96xf32>
    %c15 = arith.constant 15 : index
    %c0_85 = arith.constant 0 : index
    %84 = vector.load %arg17[%c15, %c0_85] : memref<24x96xf32, #tpu.memory_space<vmem>>, vector<8x96xf32>
    %85 = tpu.concatenate %83, %84 in 0 : vector<8x96xf32>, vector<8x96xf32> -> vector<16x96xf32>
    %c3_86 = arith.constant 3 : index
    %c0_87 = arith.constant 0 : index
    %c0_88 = arith.constant 0 : index
    %86 = vector.load %arg5[%c3_86, %c0_87, %c0_88] : memref<5x96x128xf32, #tpu.memory_space<vmem>>, vector<1x96x128xf32>
    %87 = vector.shape_cast %86 : vector<1x96x128xf32> to vector<96x128xf32>
    %cst_89 = arith.constant dense<0.000000e+00> : vector<16x128xf32>
    %88 = tpu.matmul %85, %87, %cst_89 {dimension_numbers = #tpu.dot_dimension_numbers<[1], [0], [0], [1], [0, 0, 1, 1], [], []>} : vector<16x96xf32>, vector<96x128xf32>, vector<16x128xf32> -> vector<16x128xf32>
    %89 = arith.addf %82, %88 : vector<16x128xf32>
    %c4_90 = arith.constant 4 : index
    %c0_91 = arith.constant 0 : index
    %90 = vector.load %arg17[%c4_90, %c0_91] : memref<24x96xf32, #tpu.memory_space<vmem>>, vector<8x96xf32>
    %c16 = arith.constant 16 : index
    %c0_92 = arith.constant 0 : index
    %91 = vector.load %arg17[%c16, %c0_92] : memref<24x96xf32, #tpu.memory_space<vmem>>, vector<8x96xf32>
    %92 = tpu.concatenate %90, %91 in 0 : vector<8x96xf32>, vector<8x96xf32> -> vector<16x96xf32>
    %c4_93 = arith.constant 4 : index
    %c0_94 = arith.constant 0 : index
    %c0_95 = arith.constant 0 : index
    %93 = vector.load %arg5[%c4_93, %c0_94, %c0_95] : memref<5x96x128xf32, #tpu.memory_space<vmem>>, vector<1x96x128xf32>
    %94 = vector.shape_cast %93 : vector<1x96x128xf32> to vector<96x128xf32>
    %cst_96 = arith.constant dense<0.000000e+00> : vector<16x128xf32>
    %95 = tpu.matmul %92, %94, %cst_96 {dimension_numbers = #tpu.dot_dimension_numbers<[1], [0], [0], [1], [0, 0, 1, 1], [], []>} : vector<16x96xf32>, vector<96x128xf32>, vector<16x128xf32> -> vector<16x128xf32>
    %96 = arith.addf %89, %95 : vector<16x128xf32>
    %c0_97 = arith.constant 0 : index
    %c0_98 = arith.constant 0 : index
    %97 = vector.load %arg6[%c0_97, %c0_98] : memref<1x128xf32, #tpu.memory_space<vmem>>, vector<1x128xf32>
    %98 = vector.broadcast %97 : vector<1x128xf32> to vector<16x128xf32>
    %99 = arith.addf %96, %98 : vector<16x128xf32>
    %cst_99 = arith.constant 0.000000e+00 : f32
    %100 = vector.broadcast %cst_99 : f32 to vector<16x128xf32>
    %101 = arith.maximumf %99, %100 : vector<16x128xf32>
    %c0_100 = arith.constant 0 : index
    %c0_101 = arith.constant 0 : index
    %102 = vector.load %arg18[%c0_100, %c0_101] : memref<16x128xf32, #tpu.memory_space<vmem>>, vector<16x128xf32>
    tpu.vector_store %arg18[%c0_100, %c0_101], %101 {strides = array<i32>} : memref<16x128xf32, #tpu.memory_space<vmem>>, vector<16x128xf32>,
    %c0_102 = arith.constant 0 : index
    %c0_103 = arith.constant 0 : index
    %103 = vector.load %arg18[%c0_102, %c0_103] : memref<16x128xf32, #tpu.memory_space<vmem>>, vector<16x64xf32>
    %c0_104 = arith.constant 0 : index
    %c64 = arith.constant 64 : index
    %104 = vector.load %arg18[%c0_104, %c64] : memref<16x128xf32, #tpu.memory_space<vmem>>, vector<16x64xf32>
    %105 = arith.maximumf %103, %104 : vector<16x64xf32>
    %c0_105 = arith.constant 0 : index
    %c0_106 = arith.constant 0 : index
    %106 = vector.load %arg19[%c0_105, %c0_106] : memref<16x64xf32, #tpu.memory_space<vmem>>, vector<16x64xf32>
    tpu.vector_store %arg19[%c0_105, %c0_106], %105 {strides = array<i32>} : memref<16x64xf32, #tpu.memory_space<vmem>>, vector<16x64xf32>,
    %c0_107 = arith.constant 0 : index
    %c0_108 = arith.constant 0 : index
    %107 = vector.load %arg19[%c0_107, %c0_108] : memref<16x64xf32, #tpu.memory_space<vmem>>, vector<1x64xf32>
    %c1_109 = arith.constant 1 : index
    %c0_110 = arith.constant 0 : index
    %108 = vector.load %arg19[%c1_109, %c0_110] : memref<16x64xf32, #tpu.memory_space<vmem>>, vector<1x64xf32>
    %109 = arith.maximumf %107, %108 : vector<1x64xf32>
    %c0_111 = arith.constant 0 : index
    %c0_112 = arith.constant 0 : index
    %110 = vector.load %arg20[%c0_111, %c0_112] : memref<2x256xf32, #tpu.memory_space<vmem>>, vector<1x64xf32>
    tpu.vector_store %arg20[%c0_111, %c0_112], %109 {strides = array<i32>} : memref<2x256xf32, #tpu.memory_space<vmem>>, vector<1x64xf32>,
    %c2_113 = arith.constant 2 : index
    %c0_114 = arith.constant 0 : index
    %111 = vector.load %arg19[%c2_113, %c0_114] : memref<16x64xf32, #tpu.memory_space<vmem>>, vector<1x64xf32>
    %c3_115 = arith.constant 3 : index
    %c0_116 = arith.constant 0 : index
    %112 = vector.load %arg19[%c3_115, %c0_116] : memref<16x64xf32, #tpu.memory_space<vmem>>, vector<1x64xf32>
    %113 = arith.maximumf %111, %112 : vector<1x64xf32>
    %c0_117 = arith.constant 0 : index
    %c64_118 = arith.constant 64 : index
    %114 = vector.load %arg20[%c0_117, %c64_118] : memref<2x256xf32, #tpu.memory_space<vmem>>, vector<1x64xf32>
    tpu.vector_store %arg20[%c0_117, %c64_118], %113 {strides = array<i32>} : memref<2x256xf32, #tpu.memory_space<vmem>>, vector<1x64xf32>,
    %c4_119 = arith.constant 4 : index
    %c0_120 = arith.constant 0 : index
    %115 = vector.load %arg19[%c4_119, %c0_120] : memref<16x64xf32, #tpu.memory_space<vmem>>, vector<1x64xf32>
    %c5 = arith.constant 5 : index
    %c0_121 = arith.constant 0 : index
    %116 = vector.load %arg19[%c5, %c0_121] : memref<16x64xf32, #tpu.memory_space<vmem>>, vector<1x64xf32>
    %117 = arith.maximumf %115, %116 : vector<1x64xf32>
    %c0_122 = arith.constant 0 : index
    %c128 = arith.constant 128 : index
    %118 = vector.load %arg20[%c0_122, %c128] : memref<2x256xf32, #tpu.memory_space<vmem>>, vector<1x64xf32>
    tpu.vector_store %arg20[%c0_122, %c128], %117 {strides = array<i32>} : memref<2x256xf32, #tpu.memory_space<vmem>>, vector<1x64xf32>,
    %c6 = arith.constant 6 : index
    %c0_123 = arith.constant 0 : index
    %119 = vector.load %arg19[%c6, %c0_123] : memref<16x64xf32, #tpu.memory_space<vmem>>, vector<1x64xf32>
    %c7 = arith.constant 7 : index
    %c0_124 = arith.constant 0 : index
    %120 = vector.load %arg19[%c7, %c0_124] : memref<16x64xf32, #tpu.memory_space<vmem>>, vector<1x64xf32>
    %121 = arith.maximumf %119, %120 : vector<1x64xf32>
    %c0_125 = arith.constant 0 : index
    %c192 = arith.constant 192 : index
    %122 = vector.load %arg20[%c0_125, %c192] : memref<2x256xf32, #tpu.memory_space<vmem>>, vector<1x64xf32>
    tpu.vector_store %arg20[%c0_125, %c192], %121 {strides = array<i32>} : memref<2x256xf32, #tpu.memory_space<vmem>>, vector<1x64xf32>,
    %c8 = arith.constant 8 : index
    %c0_126 = arith.constant 0 : index
    %123 = vector.load %arg19[%c8, %c0_126] : memref<16x64xf32, #tpu.memory_space<vmem>>, vector<1x64xf32>
    %c9 = arith.constant 9 : index
    %c0_127 = arith.constant 0 : index
    %124 = vector.load %arg19[%c9, %c0_127] : memref<16x64xf32, #tpu.memory_space<vmem>>, vector<1x64xf32>
    %125 = arith.maximumf %123, %124 : vector<1x64xf32>
    %c1_128 = arith.constant 1 : index
    %c0_129 = arith.constant 0 : index
    %126 = vector.load %arg20[%c1_128, %c0_129] : memref<2x256xf32, #tpu.memory_space<vmem>>, vector<1x64xf32>
    tpu.vector_store %arg20[%c1_128, %c0_129], %125 {strides = array<i32>} : memref<2x256xf32, #tpu.memory_space<vmem>>, vector<1x64xf32>,
    %c10 = arith.constant 10 : index
    %c0_130 = arith.constant 0 : index
    %127 = vector.load %arg19[%c10, %c0_130] : memref<16x64xf32, #tpu.memory_space<vmem>>, vector<1x64xf32>
    %c11 = arith.constant 11 : index
    %c0_131 = arith.constant 0 : index
    %128 = vector.load %arg19[%c11, %c0_131] : memref<16x64xf32, #tpu.memory_space<vmem>>, vector<1x64xf32>
    %129 = arith.maximumf %127, %128 : vector<1x64xf32>
    %c1_132 = arith.constant 1 : index
    %c64_133 = arith.constant 64 : index
    %130 = vector.load %arg20[%c1_132, %c64_133] : memref<2x256xf32, #tpu.memory_space<vmem>>, vector<1x64xf32>
    tpu.vector_store %arg20[%c1_132, %c64_133], %129 {strides = array<i32>} : memref<2x256xf32, #tpu.memory_space<vmem>>, vector<1x64xf32>,
    %c12_134 = arith.constant 12 : index
    %c0_135 = arith.constant 0 : index
    %131 = vector.load %arg19[%c12_134, %c0_135] : memref<16x64xf32, #tpu.memory_space<vmem>>, vector<1x64xf32>
    %c13_136 = arith.constant 13 : index
    %c0_137 = arith.constant 0 : index
    %132 = vector.load %arg19[%c13_136, %c0_137] : memref<16x64xf32, #tpu.memory_space<vmem>>, vector<1x64xf32>
    %133 = arith.maximumf %131, %132 : vector<1x64xf32>
    %c1_138 = arith.constant 1 : index
    %c128_139 = arith.constant 128 : index
    %134 = vector.load %arg20[%c1_138, %c128_139] : memref<2x256xf32, #tpu.memory_space<vmem>>, vector<1x64xf32>
    tpu.vector_store %arg20[%c1_138, %c128_139], %133 {strides = array<i32>} : memref<2x256xf32, #tpu.memory_space<vmem>>, vector<1x64xf32>,
    %c14_140 = arith.constant 14 : index
    %c0_141 = arith.constant 0 : index
    %135 = vector.load %arg19[%c14_140, %c0_141] : memref<16x64xf32, #tpu.memory_space<vmem>>, vector<1x64xf32>
    %c15_142 = arith.constant 15 : index
    %c0_143 = arith.constant 0 : index
    %136 = vector.load %arg19[%c15_142, %c0_143] : memref<16x64xf32, #tpu.memory_space<vmem>>, vector<1x64xf32>
    %137 = arith.maximumf %135, %136 : vector<1x64xf32>
    %c1_144 = arith.constant 1 : index
    %c192_145 = arith.constant 192 : index
    %138 = vector.load %arg20[%c1_144, %c192_145] : memref<2x256xf32, #tpu.memory_space<vmem>>, vector<1x64xf32>
    tpu.vector_store %arg20[%c1_144, %c192_145], %137 {strides = array<i32>} : memref<2x256xf32, #tpu.memory_space<vmem>>, vector<1x64xf32>,
    %c0_146 = arith.constant 0 : index
    %c0_147 = arith.constant 0 : index
    %139 = vector.load %arg20[%c0_146, %c0_147] : memref<2x256xf32, #tpu.memory_space<vmem>>, vector<2x256xf32>
    %cst_148 = arith.constant dense<0.000000e+00> : vector<256xf32>
    %140 = vector.multi_reduction <add>, %139, %cst_148 [0] : vector<2x256xf32> to vector<256xf32>
    %141 = vector.shape_cast %140 : vector<256xf32> to vector<1x256xf32>
    %cst_149 = arith.constant 2.000000e+00 : f32
    %142 = vector.broadcast %cst_149 : f32 to vector<1x256xf32>
    %143 = arith.divf %141, %142 : vector<1x256xf32>
    %c0_150 = arith.constant 0 : index
    %c0_151 = arith.constant 0 : index
    %144 = vector.load %arg9[%c0_150, %c0_151] : memref<256x16xf32, #tpu.memory_space<vmem>>, vector<256x16xf32>
    %cst_152 = arith.constant dense<0.000000e+00> : vector<1x16xf32>
    %145 = tpu.matmul %143, %144, %cst_152 {dimension_numbers = #tpu.dot_dimension_numbers<[1], [0], [0], [1], [0, 0, 1, 1], [], []>} : vector<1x256xf32>, vector<256x16xf32>, vector<1x16xf32> -> vector<1x16xf32>
    %c0_153 = arith.constant 0 : index
    %c0_154 = arith.constant 0 : index
    %146 = vector.load %arg10[%c0_153, %c0_154] : memref<16x256xf32, #tpu.memory_space<vmem>>, vector<16x256xf32>
    %cst_155 = arith.constant dense<0.000000e+00> : vector<1x256xf32>
    %147 = tpu.matmul %145, %146, %cst_155 {dimension_numbers = #tpu.dot_dimension_numbers<[1], [0], [0], [1], [0, 0, 1, 1], [], []>} : vector<1x16xf32>, vector<16x256xf32>, vector<1x256xf32> -> vector<1x256xf32>
    %148 = vector.broadcast %147 : vector<1x256xf32> to vector<2x256xf32>
    %149 = arith.subf %139, %148 : vector<2x256xf32>
    %150 = arith.mulf %149, %149 : vector<2x256xf32>
    %cst_156 = arith.constant dense<0.000000e+00> : vector<256xf32>
    %151 = vector.multi_reduction <add>, %150, %cst_156 [0] : vector<2x256xf32> to vector<256xf32>
    %152 = vector.shape_cast %151 : vector<256xf32> to vector<1x256xf32>
    %cst_157 = arith.constant 2.000000e+00 : f32
    %153 = vector.broadcast %cst_157 : f32 to vector<1x256xf32>
    %154 = arith.divf %152, %153 : vector<1x256xf32>
    %c0_158 = arith.constant 0 : index
    %c0_159 = arith.constant 0 : index
    %155 = vector.load %arg9[%c0_158, %c0_159] : memref<256x16xf32, #tpu.memory_space<vmem>>, vector<256x16xf32>
    %cst_160 = arith.constant dense<0.000000e+00> : vector<1x16xf32>
    %156 = tpu.matmul %154, %155, %cst_160 {dimension_numbers = #tpu.dot_dimension_numbers<[1], [0], [0], [1], [0, 0, 1, 1], [], []>} : vector<1x256xf32>, vector<256x16xf32>, vector<1x16xf32> -> vector<1x16xf32>
    %cst_161 = arith.constant 9.99999974E-6 : f32
    %157 = vector.broadcast %cst_161 : f32 to vector<1x16xf32>
    %158 = arith.addf %156, %157 : vector<1x16xf32>
    %159 = math.rsqrt %158 : vector<1x16xf32>
    %c0_162 = arith.constant 0 : index
    %c0_163 = arith.constant 0 : index
    %160 = vector.load %arg7[%c0_162, %c0_163] : memref<1x16xf32, #tpu.memory_space<vmem>>, vector<1x16xf32>
    %161 = arith.mulf %160, %159 : vector<1x16xf32>
    %c0_164 = arith.constant 0 : index
    %c0_165 = arith.constant 0 : index
    %162 = vector.load %arg10[%c0_164, %c0_165] : memref<16x256xf32, #tpu.memory_space<vmem>>, vector<16x256xf32>
    %cst_166 = arith.constant dense<0.000000e+00> : vector<1x256xf32>
    %163 = tpu.matmul %161, %162, %cst_166 {dimension_numbers = #tpu.dot_dimension_numbers<[1], [0], [0], [1], [0, 0, 1, 1], [], []>} : vector<1x16xf32>, vector<16x256xf32>, vector<1x256xf32> -> vector<1x256xf32>
    %c0_167 = arith.constant 0 : index
    %c0_168 = arith.constant 0 : index
    %164 = vector.load %arg8[%c0_167, %c0_168] : memref<1x16xf32, #tpu.memory_space<vmem>>, vector<1x16xf32>
    %c0_169 = arith.constant 0 : index
    %c0_170 = arith.constant 0 : index
    %165 = vector.load %arg10[%c0_169, %c0_170] : memref<16x256xf32, #tpu.memory_space<vmem>>, vector<16x256xf32>
    %cst_171 = arith.constant dense<0.000000e+00> : vector<1x256xf32>
    %166 = tpu.matmul %164, %165, %cst_171 {dimension_numbers = #tpu.dot_dimension_numbers<[1], [0], [0], [1], [0, 0, 1, 1], [], []>} : vector<1x16xf32>, vector<16x256xf32>, vector<1x256xf32> -> vector<1x256xf32>
    %167 = vector.broadcast %163 : vector<1x256xf32> to vector<2x256xf32>
    %168 = arith.mulf %149, %167 : vector<2x256xf32>
    %169 = vector.broadcast %166 : vector<1x256xf32> to vector<2x256xf32>
    %170 = arith.addf %168, %169 : vector<2x256xf32>
    %c0_172 = arith.constant 0 : index
    %c0_173 = arith.constant 0 : index
    %171 = vector.load %arg11[%c0_172, %c0_173] : memref<256x120xf32, #tpu.memory_space<vmem>>, vector<256x120xf32>
    %cst_174 = arith.constant dense<0.000000e+00> : vector<2x120xf32>
    %172 = tpu.matmul %170, %171, %cst_174 {dimension_numbers = #tpu.dot_dimension_numbers<[1], [0], [0], [1], [0, 0, 1, 1], [], []>} : vector<2x256xf32>, vector<256x120xf32>, vector<2x120xf32> -> vector<2x120xf32>
    %c0_175 = arith.constant 0 : index
    %c0_176 = arith.constant 0 : index
    %173 = vector.load %arg12[%c0_175, %c0_176] : memref<1x120xf32, #tpu.memory_space<vmem>>, vector<1x120xf32>
    %174 = vector.broadcast %173 : vector<1x120xf32> to vector<2x120xf32>
    %175 = arith.addf %172, %174 : vector<2x120xf32>
    %cst_177 = arith.constant 0.000000e+00 : f32
    %176 = vector.broadcast %cst_177 : f32 to vector<2x120xf32>
    %177 = arith.maximumf %175, %176 : vector<2x120xf32>
    %c0_178 = arith.constant 0 : index
    %c0_179 = arith.constant 0 : index
    %178 = vector.load %arg13[%c0_178, %c0_179] : memref<120x10xf32, #tpu.memory_space<vmem>>, vector<120x10xf32>
    %cst_180 = arith.constant dense<0.000000e+00> : vector<2x10xf32>
    %179 = tpu.matmul %177, %178, %cst_180 {dimension_numbers = #tpu.dot_dimension_numbers<[1], [0], [0], [1], [0, 0, 1, 1], [], []>} : vector<2x120xf32>, vector<120x10xf32>, vector<2x10xf32> -> vector<2x10xf32>
    %c0_181 = arith.constant 0 : index
    %c0_182 = arith.constant 0 : index
    %180 = vector.load %arg14[%c0_181, %c0_182] : memref<1x10xf32, #tpu.memory_space<vmem>>, vector<1x10xf32>
    %181 = vector.broadcast %180 : vector<1x10xf32> to vector<2x10xf32>
    %182 = arith.addf %179, %181 : vector<2x10xf32>
    %cst_183 = arith.constant 0.000000e+00 : f32
    %183 = vector.broadcast %cst_183 : f32 to vector<2x10xf32>
    %184 = arith.maximumf %182, %183 : vector<2x10xf32>
    %c0_184 = arith.constant 0 : index
    %c0_185 = arith.constant 0 : index
    %185 = vector.load %arg15[%c0_184, %c0_185] : memref<2x10xf32, #tpu.memory_space<vmem>>, vector<2x10xf32>
    tpu.vector_store %arg15[%c0_184, %c0_185], %184 {strides = array<i32>} : memref<2x10xf32, #tpu.memory_space<vmem>>, vector<2x10xf32>,
    return
  }
}

</mosaic_0001>

<bundles_post_ra>
// kernel: mnist_forward.1
= control target key start
LH: loop header
LB: loop body
LE: loop exit
PB: predicated region body
PF: predicated region fallthrough
CT: control target
= control target key end

     0   :  { %vm100_vm0 = vcmask 1043456   ;;  %vm81_vm1 = vcmask 228352   ;;  %v3049_v18 = vmov 0.0   ;;  %s4093_s0 = inlined_call_operand.vmem [shape: f32[2,28,28], index: 0, kind: input, shape index: {}]   ;;  %s4094_s1 = inlined_call_operand.vmem [shape: f32[5,28,192], index: 1, kind: input, shape index: {}]   ;;  %s4095_s2 = inlined_call_operand.vmem [shape: f32[1,192], index: 2, kind: input, shape index: {}]   ;;  %s4096_s3 = inlined_call_operand.vmem [shape: f32[24,48], index: 3, kind: input, shape index: {}]   ;;  %s4097_s4 = inlined_call_operand.vmem [shape: f32[24,48], index: 4, kind: input, shape index: {}]   ;;  %s4098_s5 = inlined_call_operand.vmem [shape: f32[5,96,128], index: 5, kind: input, shape index: {}]   ;;  %s4099_s6 = inlined_call_operand.vmem [shape: f32[1,128], index: 6, kind: input, shape index: {}]   ;;  %s4100_s7 = inlined_call_operand.vmem [shape: f32[1,16], index: 7, kind: input, shape index: {}]   ;;  %s4101_s8 = inlined_call_operand.vmem [shape: f32[1,16], index: 8, kind: input, shape index: {}]   ;;  %s4102_s9 = inlined_call_operand.vmem [shape: f32[256,16], index: 9, kind: input, shape index: {}]   ;;  %s4103_s10 = inlined_call_operand.vmem [shape: f32[16,256], index: 10, kind: input, shape index: {}]   ;;  %s4104_s11 = inlined_call_operand.vmem [shape: f32[256,120], index: 11, kind: input, shape index: {}]   ;;  %s4105_s12 = inlined_call_operand.vmem [shape: f32[1,120], index: 12, kind: input, shape index: {}]   ;;  %s4106_s13 = inlined_call_operand.vmem [shape: f32[120,10], index: 13, kind: input, shape index: {}]   ;;  %s4107_s14 = inlined_call_operand.vmem [shape: f32[1,10], index: 14, kind: input, shape index: {}]   ;;  %s4108_s15 = inlined_call_operand.hbm [shape: f32[2,10], index: 15, kind: output, shape index: {}]  }
   0x1   :  { %v2455_v0 = vld [vmem:[%s4094_s1 + $0x78] sm:$0xf]  ;;  %v2453_v2 = vld [vmem:[%s4094_s1 + $0x68] sm:$0xff]  ;;  %v2454_v3 = vld [vmem:[%s4094_s1 + $0x70] sm:$0xf]  ;;  %171 = vmatprep.mubr.f32.mxu0 %v3049_v18  ;;  %296 = vmatprep.mubr.f32.mxu1 %v3049_v18 }
   0x2   :  { %v65_v1 = vld [vmem:[%s4094_s1 + $0x38] sm:$0xf]  ;;  %2456 = vmatprep.subr.msk.mxu0 %vm100_vm0, %v2455_v0  ;;  %v64_v4 = vld [vmem:[%s4094_s1 + $0x30] sm:$0xf]  ;;  %v63_v5 = vld [vmem:[%s4094_s1 + $0x28] sm:$0xff] }
   0x3   :  { %2464 = vmatprep.subr.msk.mxu1 %vm100_vm0, %v65_v1  ;;  %2457 = vmatpush1.msk.msra.mxu0 %vm100_vm0, %v2454_v3  ;;  %v2452_v6 = vld [vmem:[%s4094_s1 + $0x60] sm:$0xff]  ;;  %v2451_v8 = vld [vmem:[%s4094_s1 + $0x58] sm:$0xff]  ;;  %v2450_v10 = vld [vmem:[%s4094_s1 + $0x50] sm:$0xff] }
   0x4   :  { %2465 = vmatpush1.msk.msra.mxu1 %vm100_vm0, %v64_v4  ;;  %v62_v7 = vld [vmem:[%s4094_s1 + $0x20] sm:$0xff]  ;;  %133 = vmatprep.subr.mxu0 %v2453_v2  ;;  %v61_v9 = vld [vmem:[%s4094_s1 + $0x18] sm:$0xff]  ;;  %v60_v11 = vld [vmem:[%s4094_s1 + $0x10] sm:$0xff] }
   0x5   :  { %258 = vmatprep.subr.mxu1 %v63_v5  ;;  %134 = vmatpush1.msra.mxu0 %v2452_v6  ;;  %v2449_v12 = vld [vmem:[%s4094_s1 + $0x48] sm:$0xff]  ;;  %v2448_v14 = vld [vmem:[%s4094_s1 + $0x40] sm:$0xff]  ;;  %v2482_v19 = vld [vmem:[%s4094_s1 + $0xb8] sm:$0xf] }
   0x6   :  { %259 = vmatpush1.msra.mxu1 %v62_v7  ;;  %v59_v13 = vld [vmem:[%s4094_s1 + $0x8] sm:$0xff]  ;;  %135 = vmatprep.subr.mxu0 %v2451_v8  ;;  %v58_v15 = vld [vmem:[%s4094_s1] sm:$0xff]  ;;  %v2481_v20 = vld [vmem:[%s4094_s1 + $0xb0] sm:$0xf] }
   0x7   :  { %260 = vmatprep.subr.mxu1 %v61_v9  ;;  %136 = vmatpush1.msra.mxu0 %v2450_v10  ;;  %v66_v16 = vld [vmem:[%s4093_s0 + $0x1] sm:$0xff]  ;;  %v2501_v21 = vld [vmem:[%s4094_s1 + $0xf8] sm:$0xf]  ;;  %v2500_v22 = vld [vmem:[%s4094_s1 + $0xf0] sm:$0xf] }
   0x8   :  { %261 = vmatpush1.msra.mxu1 %v60_v11  ;;  %137 = vmatprep.subr.mxu0 %v2449_v12  ;;  %v51_v17 = vld [vmem:[%s4093_s0] sm:$0xff]  ;;  %v67_v23 = vld [vmem:[%s4093_s0 + $0x9] sm:$0xff]  ;;  %v68_v29 = vld [vmem:[%s4093_s0 + $0x11] sm:$0xff] }
   0x9   :  { %262 = vmatprep.subr.mxu1 %v59_v13  ;;  %138 = vmatpush1.msra.mxu0 %v2448_v14  ;;  %v52_v24 = vld [vmem:[%s4093_s0 + $0x8] sm:$0xff]  ;;  %v2479_v27 = vld [vmem:[%s4094_s1 + $0xa0] sm:$0xff]  ;;  %v53_v30 = vld [vmem:[%s4093_s0 + $0x10] sm:$0xff] }
   0xa   :  { %263 = vmatpush1.msra.mxu1 %v58_v15  ;;  %2458 = vmatmul.mubr.msk.f32.vlgmr.msra.gmra.mxu0 %vm81_vm1, %v66_v16  ;;  %v2480_v25 = vld [vmem:[%s4094_s1 + $0xa8] sm:$0xff]  ;;  %v2498_v28 = vld [vmem:[%s4094_s1 + $0xe0] sm:$0xff]  ;;  %v2478_v31 = vld [vmem:[%s4094_s1 + $0x98] sm:$0xff] }
   0xb   :  { %2466 = vmatmul.mubr.msk.f32.vlgmr.msra.gmra.mxu1 %vm81_vm1, %v51_v17  ;;  %177 = vmatprep.mubr.f32.mxu0 %v3049_v18  ;;  %v2499_v26 = vld [vmem:[%s4094_s1 + $0xe8] sm:$0xff]  ;;  %v2497_v32 = vld [vmem:[%s4094_s1 + $0xd8] sm:$0xff]  ;;  %v2477_v33 = vld [vmem:[%s4094_s1 + $0x90] sm:$0xff] }
   0xc   :  { %302 = vmatprep.mubr.f32.mxu1 %v3049_v18  ;;  %2483 = vmatprep.subr.msk.mxu0 %vm100_vm0, %v2482_v19  ;;  %v2496_v34 = vld [vmem:[%s4094_s1 + $0xd0] sm:$0xff]  ;;  %v2445_v35 = vld [vmem:[%s4093_s0 + $0x21] sm:$0xff] }
   0xd   :  { %2502 = vmatprep.subr.msk.mxu1 %vm100_vm0, %v2501_v21  ;;  %2484 = vmatpush1.msk.msra.mxu0 %vm100_vm0, %v2481_v20  ;;  %v2442_v36 = vld [vmem:[%s4093_s0 + $0x20] sm:$0xff]  ;;  %v2476_v37 = vld [vmem:[%s4094_s1 + $0x88] sm:$0xff] }
   0xe   :  { %2503 = vmatpush1.msk.msra.mxu1 %vm100_vm0, %v2500_v22  ;;  %2459 = vmatmul.mubr.msk.f32.gmra.mxu0 %vm81_vm1, %v67_v23  ;;  %v2495_v38 = vld [vmem:[%s4094_s1 + $0xc8] sm:$0xff]  ;;  %v2475_v39 = vld [vmem:[%s4094_s1 + $0x80] sm:$0xff] }
   0xf   :  { %2467 = vmatmul.mubr.msk.f32.gmra.mxu1 %vm81_vm1, %v52_v24  ;;  %183 = vmatprep.mubr.f32.mxu0 %v3049_v18  ;;  %v2494_v40 = vld [vmem:[%s4094_s1 + $0xc0] sm:$0xff]  ;;  %v2446_v41 = vld [vmem:[%s4093_s0 + $0x29] sm:$0xff] }
  0x10   :  { %308 = vmatprep.mubr.f32.mxu1 %v3049_v18  ;;  %398 = vmatprep.subr.mxu0 %v2480_v25  ;;  %v2443_v42 = vld [vmem:[%s4093_s0 + $0x28] sm:$0xff] }
  0x11   :  { %550 = vmatprep.subr.mxu1 %v2499_v26  ;;  %399 = vmatpush1.msra.mxu0 %v2479_v27 }
  0x12   :  { %551 = vmatpush1.msra.mxu1 %v2498_v28  ;;  %2460 = vmatmul.mubr.msk.f32.gmra.mxu0 %vm81_vm1, %v68_v29 }
  0x13   :  { %2468 = vmatmul.mubr.msk.f32.gmra.mxu1 %vm81_vm1, %v53_v30  ;;  %189 = vmatprep.mubr.f32.mxu0 %v3049_v18 }
  0x14   :  { %314 = vmatprep.mubr.f32.mxu1 %v3049_v18  ;;  %400 = vmatprep.subr.mxu0 %v2478_v31 }
  0x15   :  { %552 = vmatprep.subr.mxu1 %v2497_v32  ;;  %401 = vmatpush1.msra.mxu0 %v2477_v33 }
  0x16   :  { %553 = vmatpush1.msra.mxu1 %v2496_v34  ;;  %2461 = vmatmul.mubr.msk.f32.gmra.mxu0 %vm81_vm1, %v2445_v35 }
  0x17   :  { %2469 = vmatmul.mubr.msk.f32.gmra.mxu1 %vm81_vm1, %v2442_v36  ;;  %195 = vmatprep.mubr.f32.mxu0 %v3049_v18 }
  0x18   :  { %320 = vmatprep.mubr.f32.mxu1 %v3049_v18 }
  0x19   :  { %20 = vsyncpa [#allocation8], 0  ;;  %402 = vmatprep.subr.mxu0 %v2476_v37  ;;  %554 = vmatprep.subr.mxu1 %v2495_v38  ;;  %v2520_v43 = vld [vmem:[%s4094_s1 + $0x138] sm:$0xf]  ;;  %v2444_v45 = vld [vmem:[%s4093_s0 + $0x30] sm:$0xff]  ;;  %vm826_vm2 = vcmask 523264  }
  0x1a   :  { %403 = vmatpush1.msra.mxu0 %v2475_v39  ;;  %555 = vmatpush1.msra.mxu1 %v2494_v40  ;;  %v2447_v44 = vld [vmem:[%s4093_s0 + $0x31] sm:$0xff]  ;;  %v333_v46 = vld [vmem:[%s4093_s0 + $0x2] sm:$0xff]  ;;  %vm3051_vm3 = vmmov 0   ;;  %vm886_vm4 = vcmask 261120   ;;  %vm908_vm5 = vcmask 392192   ;;  %vm1093_vm6 = vcmask 785408  }
  0x1b   :  { %2462 = vmatmul.mubr.msk.f32.gmra.mxu0 %vm81_vm1, %v2446_v41  ;;  %2470 = vmatmul.mubr.msk.f32.gmra.mxu1 %vm81_vm1, %v2443_v42  ;;  %v485_v47 = vld [vmem:[%s4093_s0 + $0x3] sm:$0xff]  ;;  %v2519_v48 = vld [vmem:[%s4094_s1 + $0x130] sm:$0xf]  ;;  %v2516_v53 = vld [vmem:[%s4094_s1 + $0x118] sm:$0xff]  ;;  %v791_v42 = vlaneseq  ;;  %s3052_s19 = smov 64   ;;  %vm1612_vm7 = vcmask 516096  }
  0x1c   :  { %201 = vmatprep.mubr.f32.mxu0 %v3049_v18  ;;  %326 = vmatprep.mubr.f32.mxu1 %v3049_v18  ;;  %v2518_v49 = vld [vmem:[%s4094_s1 + $0x128] sm:$0xff]  ;;  %v2517_v52 = vld [vmem:[%s4094_s1 + $0x120] sm:$0xff]  ;;  %v335_v54 = vld [vmem:[%s4093_s0 + $0x12] sm:$0xff]  ;;  %vm1628_vm8 = vcmask 1040896   ;;  %vm1699_vm9 = vcmask 1041408   ;;  %vm1823_vm10 = vcmask 130048  }
  0x1d   :  { %2521 = vmatprep.subr.msk.mxu0 %vm100_vm0, %v2520_v43  ;;  %2809 = vmatprep.subr.mxu1 %v3049_v18  ;;  %v334_v50 = vld [vmem:[%s4093_s0 + $0xa] sm:$0xff]  ;;  %v487_v55 = vld [vmem:[%s4093_s0 + $0x13] sm:$0xff]  ;;  %v2472_v58 = vld [vmem:[%s4093_s0 + $0x22] sm:$0xff]  ;;  %vm2351_vm11 = vcmask 982016   ;;  %vm2426_vm12 = vcmask 74752  }
  0x1e   :  { %v486_v51 = vld [vmem:[%s4093_s0 + $0xb] sm:$0xff]  ;;  %v2491_v59 = vld [vmem:[%s4093_s0 + $0x23] sm:$0xff]  ;;  %v2493_v0 = vld [vmem:[%s4093_s0 + $0x33] sm:$0xff] }
  0x1f   :  { %2463 = vmatmul.mubr.msk.f32.gmra.mxu0 %vm81_vm1, %v2447_v44  ;;  %2471 = vmatmul.mubr.msk.f32.gmra.mxu1 %vm81_vm1, %v2444_v45  ;;  %v2515_v56 = vld [vmem:[%s4094_s1 + $0x110] sm:$0xff]  ;;  %v2514_v57 = vld [vmem:[%s4094_s1 + $0x108] sm:$0xff]  ;;  %v2513_v60 = vld [vmem:[%s4094_s1 + $0x100] sm:$0xff] }
  0x20   :  { %436 = vmatprep.mubr.f32.mxu0 %v3049_v18  ;;  %588 = vmatprep.mubr.f32.mxu1 %v3049_v18  ;;  %v2473_v61 = vld [vmem:[%s4093_s0 + $0x2a] sm:$0xff]  ;;  %v2474_v63 = vld [vmem:[%s4093_s0 + $0x32] sm:$0xff] }
  0x21   :  { %v2492_v62 = vld [vmem:[%s4093_s0 + $0x2b] sm:$0xff]  ;;  %v639_v3 = vld [vmem:[%s4093_s0 + $0x14] sm:$0xff] }
  0x22   :  { %v637_v1 = vld [vmem:[%s4093_s0 + $0x4] sm:$0xff]  ;;  %v638_v2 = vld [vmem:[%s4093_s0 + $0xc] sm:$0xff]  ;;  %v2512_v6 = vld [vmem:[%s4093_s0 + $0x34] sm:$0xff] }
  0x23   :  { %2485 = vmatmul.mubr.msk.f32.vlgmr.msra.gmra.mxu0 %vm81_vm1, %v333_v46  ;;  %2504 = vmatmul.mubr.msk.f32.vlgmr.msra.gmra.mxu1 %vm81_vm1, %v485_v47  ;;  %v2510_v4 = vld [vmem:[%s4093_s0 + $0x24] sm:$0xff]  ;;  %v2511_v5 = vld [vmem:[%s4093_s0 + $0x2c] sm:$0xff]  ;;  %v3434_v46 = vshrl.u32 %v791_v42, 7 }
  0x24   :  { %442 = vmatprep.mubr.f32.mxu0 %v3049_v18  ;;  %594 = vmatprep.mubr.f32.mxu1 %v3049_v18 }
  0x25   :  { %2522 = vmatpush1.msk.msra.mxu0 %vm100_vm0, %v2519_v48 }
  0x26   :  { %702 = vmatprep.subr.mxu0 %v2518_v49 }
  0x27   :  { %2486 = vmatmul.mubr.msk.f32.gmra.mxu0 %vm81_vm1, %v334_v50  ;;  %2505 = vmatmul.mubr.msk.f32.gmra.mxu1 %vm81_vm1, %v486_v51 }
  0x28   :  { %448 = vmatprep.mubr.f32.mxu0 %v3049_v18  ;;  %600 = vmatprep.mubr.f32.mxu1 %v3049_v18 }
  0x29   :  { %703 = vmatpush1.msra.mxu0 %v2517_v52 }
  0x2a   :  { %704 = vmatprep.subr.mxu0 %v2516_v53  ;;  %v3437_v53 = vsub.s32 0, %v3434_v46 }
  0x2b   :  { %2487 = vmatmul.mubr.msk.f32.gmra.mxu0 %vm81_vm1, %v335_v54  ;;  %2506 = vmatmul.mubr.msk.f32.gmra.mxu1 %vm81_vm1, %v487_v55  ;;  %v789_v55 = vld [vmem:[%s4095_s2] sm:$0x3]  ;;  %s3050_s2 = smov 32  }
  0x2c   :  { %454 = vmatprep.mubr.f32.mxu0 %v3049_v18  ;;  %606 = vmatprep.mubr.f32.mxu1 %v3049_v18 }
  0x2d   :  { %705 = vmatpush1.msra.mxu0 %v2515_v56 }
  0x2e   :  { %706 = vmatprep.subr.mxu0 %v2514_v57 }
  0x2f   :  { %2488 = vmatmul.mubr.msk.f32.gmra.mxu0 %vm81_vm1, %v2472_v58  ;;  %2507 = vmatmul.mubr.msk.f32.gmra.mxu1 %vm81_vm1, %v2491_v59  ;;  %v797_v58 = vsub.s32 1, %v3434_v46 }
  0x30   :  { %460 = vmatprep.mubr.f32.mxu0 %v3049_v18  ;;  %612 = vmatprep.mubr.f32.mxu1 %v3049_v18 }
  0x31   :  { %707 = vmatpush1.msra.mxu0 %v2513_v60 }
  0x33   :  { %2489 = vmatmul.mubr.msk.f32.gmra.mxu0 %vm81_vm1, %v2473_v61  ;;  %2508 = vmatmul.mubr.msk.f32.gmra.mxu1 %vm81_vm1, %v2492_v62 }
  0x34   :  { %466 = vmatprep.mubr.f32.mxu0 %v3049_v18  ;;  %618 = vmatprep.mubr.f32.mxu1 %v3049_v18 }
  0x37   :  { %2490 = vmatmul.mubr.msk.f32.gmra.mxu0 %vm81_vm1, %v2474_v63  ;;  %2509 = vmatmul.mubr.msk.f32.gmra.mxu1 %vm81_vm1, %v2493_v0  ;;  %v3448_v0 = vrot.slane %v789_v55, %v3437_v53 }
  0x38   :  { %740 = vmatprep.mubr.f32.mxu0 %v3049_v18  ;;  %2821 = vmatprep.mubr.msk.f32.mxu1 %vm3051_vm3, %v3049_v18 }
  0x3b   :  { %2523 = vmatmul.mubr.msk.f32.vlgmr.msra.gmra.mxu0 %vm81_vm1, %v637_v1 }
  0x3c   :  { %746 = vmatprep.mubr.f32.mxu0 %v3049_v18 }
  0x3f   :  { %2524 = vmatmul.mubr.msk.f32.gmra.mxu0 %vm81_vm1, %v638_v2 }
  0x40   :  { %752 = vmatprep.mubr.f32.mxu0 %v3049_v18 }
  0x43   :  { %2525 = vmatmul.mubr.msk.f32.gmra.mxu0 %vm81_vm1, %v639_v3 }
  0x44   :  { %758 = vmatprep.mubr.f32.mxu0 %v3049_v18 }
  0x47   :  { %2526 = vmatmul.mubr.msk.f32.gmra.mxu0 %vm81_vm1, %v2510_v4 }
  0x48   :  { %764 = vmatprep.mubr.f32.mxu0 %v3049_v18 }
  0x4b   :  { %2527 = vmatmul.mubr.msk.f32.gmra.mxu0 %vm81_vm1, %v2511_v5 }
  0x4c   :  { %770 = vmatprep.mubr.f32.mxu0 %v3049_v18 }
  0x4f   :  { %2528 = vmatmul.mubr.msk.f32.gmra.mxu0 %vm81_vm1, %v2512_v6  ;;  %v3450_v6 = vrot.slane %v789_v55, %v797_v58 }
  0xca   :  { %v173_v7 = vpop.f32.mrf.mxu0 }
  0xcb   :  { %v298_v8 = vpop.f32.mrf.mxu1 }
  0xcc   :  { %v175_v9 = vpop.f32.mrf.mxu0  ;;  %v299_v48 = vadd.f32 %v298_v8, %v173_v7 }
  0xcd   :  { %v300_v10 = vpop.f32.mrf.mxu1 }
  0xce   :  { %v179_v11 = vpop.f32.mrf.mxu0  ;;  %v301_v51 = vadd.f32 %v300_v10, %v175_v9 }
  0xcf   :  { %v304_v12 = vpop.f32.mrf.mxu1 }
  0xd0   :  { %v181_v13 = vpop.f32.mrf.mxu0  ;;  %v305_v56 = vadd.f32 %v304_v12, %v179_v11 }
  0xd1   :  { %v306_v14 = vpop.f32.mrf.mxu1 }
  0xd2   :  { %v185_v15 = vpop.f32.mrf.mxu0  ;;  %v307_v61 = vadd.f32 %v306_v14, %v181_v13 }
  0xd3   :  { %v310_v16 = vpop.f32.mrf.mxu1 }
  0xd4   :  { %v187_v17 = vpop.f32.mrf.mxu0  ;;  %v311_v1 = vadd.f32 %v310_v16, %v185_v15 }
  0xd5   :  { %v312_v19 = vpop.f32.mrf.mxu1 }
  0xd6   :  { %v191_v20 = vpop.f32.mrf.mxu0  ;;  %v313_v7 = vadd.f32 %v312_v19, %v187_v17 }
  0xd7   :  { %v316_v21 = vpop.f32.mrf.mxu1 }
  0xd8   :  { %v3416_v22 = vpop.f32.mrf.mxu0  ;;  %v317_v14 = vadd.f32 %v316_v21, %v191_v20 }
  0xd9   :  { %v318_v23 = vpop.f32.mrf.mxu1 }
  0xdb   :  { %v3418_v24 = vpop.f32.mrf.mxu0  ;;  %v3420_v25 = vpop.f32.mrf.mxu1 }
  0xdc   :  { %v323_v21 = vadd.f32 %v3420_v25, %v3418_v24 }
  0xdd   :  { %v3422_v26 = vpop.f32.mrf.mxu0  ;;  %v3424_v27 = vpop.f32.mrf.mxu1 }
  0xdf   :  { %v3426_v28 = vpop.f32.mrf.mxu0  ;;  %v3428_v29 = vpop.f32.mrf.mxu1 }
  0xe1   :  { %v3430_v30 = vpop.f32.mrf.mxu0  ;;  %v3432_v31 = vpop.f32.mrf.mxu1 }
  0xe3   :  { %v438_v32 = vpop.f32.mrf.mxu0  ;;  %v590_v33 = vpop.f32.mrf.mxu1 }
  0xe4   :  { %v473_v52 = vadd.f32 %v438_v32, %v299_v48 }
  0xe5   :  { %v440_v34 = vpop.f32.mrf.mxu0  ;;  %v592_v35 = vpop.f32.mrf.mxu1 }
  0xe6   :  { %v474_v57 = vadd.f32 %v440_v34, %v301_v51  ;;  %v625_v62 = vadd.f32 %v590_v33, %v473_v52 }
  0xe7   :  { %v444_v36 = vpop.f32.mrf.mxu0  ;;  %v596_v38 = vpop.f32.mrf.mxu1 }
  0xe8   :  { %v475_v63 = vadd.f32 %v444_v36, %v305_v56  ;;  %v626_v3 = vadd.f32 %v592_v35, %v474_v57  ;;  %v319_v36 = vadd.f32 %v318_v23, %v3416_v22 }
  0xe9   :  { %v446_v37 = vpop.f32.mrf.mxu0  ;;  %v598_v40 = vpop.f32.mrf.mxu1 }
  0xea   :  { %v476_v4 = vadd.f32 %v446_v37, %v307_v61  ;;  %v627_v11 = vadd.f32 %v596_v38, %v475_v63 }
  0xeb   :  { %v450_v39 = vpop.f32.mrf.mxu0  ;;  %v602_v44 = vpop.f32.mrf.mxu1 }
  0xec   :  { %v477_v8 = vadd.f32 %v450_v39, %v311_v1  ;;  %v628_v34 = vadd.f32 %v598_v40, %v476_v4 }
  0xed   :  { %v452_v41 = vpop.f32.mrf.mxu0  ;;  %v604_v49 = vpop.f32.mrf.mxu1 }
  0xee   :  { %v478_v32 = vadd.f32 %v452_v41, %v313_v7  ;;  %v629_v17 = vadd.f32 %v602_v44, %v477_v8 }
  0xef   :  { %v456_v43 = vpop.f32.mrf.mxu0  ;;  %v608_v59 = vpop.f32.mrf.mxu1 }
  0xf0   :  { %v479_v38 = vadd.f32 %v456_v43, %v317_v14  ;;  %v630_v40 = vadd.f32 %v604_v49, %v478_v32  ;;  %v325_v43 = vadd.f32 %v3424_v27, %v3422_v26 }
  0xf1   :  { %v458_v45 = vpop.f32.mrf.mxu0  ;;  %v610_v9 = vpop.f32.mrf.mxu1 }
  0xf2   :  { %v480_v48 = vadd.f32 %v458_v45, %v319_v36  ;;  %v631_v56 = vadd.f32 %v608_v59, %v479_v38  ;;  %v329_v45 = vadd.f32 %v3428_v29, %v3426_v28 }
  0xf3   :  { %v462_v47 = vpop.f32.mrf.mxu0  ;;  %v614_v19 = vpop.f32.mrf.mxu1 }
  0xf4   :  { %v481_v51 = vadd.f32 %v462_v47, %v323_v21  ;;  %v632_v61 = vadd.f32 %v610_v9, %v480_v48  ;;  %v331_v47 = vadd.f32 %v3432_v31, %v3430_v30 }
  0xf5   :  { %v464_v50 = vpop.f32.mrf.mxu0  ;;  %v616_v52 = vpop.f32.mrf.mxu1 }
  0xf6   :  { %v482_v49 = vadd.f32 %v464_v50, %v325_v43  ;;  %v633_v59 = vadd.f32 %v614_v19, %v481_v51 }
  0xf7   :  { %v3439_v54 = vpop.f32.mrf.mxu0  ;;  %v620_v63 = vpop.f32.mrf.mxu1 }
  0xf8   :  { %v634_v50 = vadd.f32 %v616_v52, %v482_v49 }
  0xf9   :  { %v3445_v60 = vpop.f32.mrf.mxu0  ;;  %v622_v8 = vpop.f32.mrf.mxu1 }
  0xfb   :  { %v742_v2 = vpop.f32.mrf.mxu0 }
  0xfc   :  { %v777_v5 = vadd.f32 %v742_v2, %v625_v62  ;;  %v483_v2 = vadd.f32 %v3439_v54, %v329_v45 }
  0xfd   :  { %v744_v10 = vpop.f32.mrf.mxu0 }
  0xfe   :  { %v3453_v12 = vadd.f32 %v3448_v0, %v777_v5  ;;  %v778_v13 = vadd.f32 %v744_v10, %v626_v3  ;;  %v484_v5 = vadd.f32 %v3445_v60, %v331_v47  ;;  %v635_v10 = vadd.f32 %v620_v63, %v483_v2 }
  0xff   :  { %v748_v33 = vpop.f32.mrf.mxu0 }
 0x100   :  { %v813_v15 = vmax.f32 %v3453_v12, 0.0  ;;  %v802_v16 = vadd.f32 %v3450_v6, %v778_v13  ;;  %v779_v35 = vadd.f32 %v748_v33, %v627_v11  ;;  %v636_v32 = vadd.f32 %v622_v8, %v484_v5  ;;  %v907_v12 = vld [vmem:[%s4096_s3 + $0x10] sm:$0xff]  ;;  %v1107_v8 = vld [vmem:[%s4098_s5 + $0x40] sm:$0xff] }
 0x101   :  { %v750_v37 = vpop.f32.mrf.mxu0  ;;  %v1109_v5 = vld [vmem:[%s4098_s5 + $0x50] sm:$0xff] }
 0x102   :  { %v814_v39 = vmax.f32 %v802_v16, 0.0  ;;  %v3459_v42 = vadd.f32 %v3448_v0, %v779_v35  ;;  %v780_v20 = vadd.f32 %v750_v37, %v628_v34 }
 0x103   :  { %v754_v41 = vpop.f32.mrf.mxu0 }
 0x104   :  { %827 = vst.msk [vmem:[#allocation2 + $0x8] sm:$0xff] %vm826_vm2, %v814_v39  ;;  %v815_v22 = vmax.f32 %v3459_v42, 0.0  ;;  %v804_v23 = vadd.f32 %v3450_v6, %v780_v20  ;;  %v781_v44 = vadd.f32 %v754_v41, %v629_v17  ;;  %v906_v42 = vld [vmem:[%s4096_s3 + $0x8] sm:$0xff] }
 0x105   :  { %v756_v55 = vpop.f32.mrf.mxu0 }
 0x106   :  { %v816_v57 = vmax.f32 %v804_v23, 0.0  ;;  %v3469_v24 = vadd.f32 %v3448_v0, %v781_v44  ;;  %v782_v25 = vadd.f32 %v756_v55, %v630_v40 }
 0x107   :  { %v760_v58 = vpop.f32.mrf.mxu0 }
 0x108   :  { %829 = vst.msk [vmem:[#allocation2 + $0x18] sm:$0xff] %vm826_vm2, %v816_v57  ;;  %v817_v62 = vmax.f32 %v3469_v24, 0.0  ;;  %v806_v26 = vadd.f32 %v3450_v6, %v782_v25  ;;  %v783_v27 = vadd.f32 %v760_v58, %v631_v56 }
 0x109   :  { %v762_v1 = vpop.f32.mrf.mxu0 }
 0x10a   :  { %v818_v3 = vmax.f32 %v806_v26, 0.0  ;;  %v3480_v28 = vadd.f32 %v3448_v0, %v783_v27  ;;  %v784_v29 = vadd.f32 %v762_v1, %v632_v61 }
 0x10b   :  { %v766_v4 = vpop.f32.mrf.mxu0  ;;  %v844_v40 = vld [vmem:[#allocation2 + $0x8] sm:$0xff] }
 0x10c   :  { %831 = vst.msk [vmem:[#allocation2 + $0x28] sm:$0xff] %vm826_vm2, %v818_v3  ;;  %v819_v7 = vmax.f32 %v3480_v28, 0.0  ;;  %v808_v30 = vadd.f32 %v3450_v6, %v784_v29  ;;  %v785_v31 = vadd.f32 %v766_v4, %v633_v59  ;;  %v1000_v28 = vld [vmem:[%s4097_s4 + $0x10] sm:$0xff]  ;;  %v2546_v29 = vld [vmem:[%s4098_s5 + $0xb8] sm:$0xff] }
 0x10d   :  { %v768_v9 = vpop.f32.mrf.mxu0  ;;  %2851 = vmatprep.subr.mxu0 %v2546_v29  ;;  %v2545_v4 = vld [vmem:[%s4098_s5 + $0xb0] sm:$0xff] }
 0x10e   :  { %v820_v54 = vmax.f32 %v808_v30, 0.0  ;;  %v809_v11 = vadd.f32 %v3448_v0, %v785_v31  ;;  %v786_v13 = vadd.f32 %v768_v9, %v634_v50  ;;  %874 = vrot.lane.b32.xlu0 %v819_v7, %s3050_s2  ;;  %v1110_v50 = vld [vmem:[%s4098_s5 + $0x58] sm:$0xff]  ;;  %2852 = vmatpush3.msra.mxu0 %v2546_v29  ;;  %v1108_v30 = vld [vmem:[%s4098_s5 + $0x48] sm:$0xff]  ;;  %v2543_v31 = vld [vmem:[%s4098_s5 + $0xa0] sm:$0xff] }
 0x10f   :  { %v772_v14 = vpop.f32.mrf.mxu0  ;;  %2853 = vmatprep.subr.mxu0 %v2545_v4  ;;  %v2542_v9 = vld [vmem:[%s4098_s5 + $0x98] sm:$0xff] }
 0x110   :  { %833 = vst.msk [vmem:[#allocation2 + $0x38] sm:$0xff] %vm826_vm2, %v820_v54  ;;  %v821_v60 = vmax.f32 %v809_v11, 0.0  ;;  %v810_v33 = vadd.f32 %v3450_v6, %v786_v13  ;;  %v787_v34 = vadd.f32 %v772_v14, %v635_v10  ;;  %2854 = vmatpush3.msra.mxu0 %v2545_v4  ;;  %v1106_v10 = vld [vmem:[%s4098_s5 + $0x38] sm:$0xff]  ;;  %v2541_v54 = vld [vmem:[%s4098_s5 + $0x90] sm:$0xff]  ;;  %v2540_v13 = vld [vmem:[%s4098_s5 + $0x88] sm:$0xff] }
 0x111   :  { %v774_v16 = vpop.f32.mrf.mxu0  ;;  %v1105_v11 = vld [vmem:[%s4098_s5 + $0x30] sm:$0xff]  ;;  %v1104_v14 = vld [vmem:[%s4098_s5 + $0x28] sm:$0xff]  ;;  %v2554_v29 = vld [vmem:[%s4098_s5 + $0xd8] sm:$0xff] }
 0x112   :  { %v822_v35 = vmax.f32 %v810_v33, 0.0  ;;  %v811_v36 = vadd.f32 %v3448_v0, %v787_v34  ;;  %v788_v17 = vadd.f32 %v774_v16, %v636_v32  ;;  %v2539_v32 = vld [vmem:[%s4098_s5 + $0x80] sm:$0xff]  ;;  %v2538_v33 = vld [vmem:[%s4098_s5 + $0x78] sm:$0xff]  ;;  %v2537_v16 = vld [vmem:[%s4098_s5 + $0x70] sm:$0xff] }
 0x113   :  { %v846_v0 = vld [vmem:[#allocation2 + $0x28] sm:$0xff]  ;;  %v1102_v34 = vld [vmem:[%s4098_s5 + $0x18] sm:$0xff]  ;;  %v2553_v4 = vld [vmem:[%s4098_s5 + $0xd0] sm:$0xff] }
 0x114   :  { %835 = vst.msk [vmem:[#allocation2 + $0x48] sm:$0xff] %vm826_vm2, %v822_v35  ;;  %v823_v19 = vmax.f32 %v811_v36, 0.0  ;;  %v812_v37 = vadd.f32 %v3450_v6, %v788_v17  ;;  %v845_v6 = vld [vmem:[#allocation2 + $0x18] sm:$0xff]  ;;  %v1101_v35 = vld [vmem:[%s4098_s5 + $0x10] sm:$0xff]  ;;  %v2536_v36 = vld [vmem:[%s4098_s5 + $0x68] sm:$0xff] }
 0x115   :  { %v1100_v17 = vld [vmem:[%s4098_s5 + $0x8] sm:$0xff] }
 0x116   :  { %v824_v38 = vmax.f32 %v812_v37, 0.0  ;;  %882 = vrot.lane.b32.xlu0 %v823_v19, %s3050_s2  ;;  %v1099_v37 = vld [vmem:[%s4098_s5] sm:$0xff] }
 0x117   :  { %v847_v39 = vld [vmem:[#allocation2 + $0x38] sm:$0xff] }
 0x118   :  { %837 = vst.msk [vmem:[#allocation2 + $0x58] sm:$0xff] %vm826_vm2, %v824_v38  ;;  %876 = vrot.lane.b32.xlu1 %v847_v39, %s3050_s2  ;;  %v2562_v38 = vld [vmem:[%s4098_s5 + $0x118] sm:$0xff] }
 0x119   :  { %v2576_v39 = vld [vmem:[%s4098_s5 + $0x178] sm:$0xff] }
 0x11b   :  { %v848_v20 = vld [vmem:[#allocation2 + $0x48] sm:$0xff] }
 0x11c   :  { %878 = vrot.lane.b32.xlu1 %v821_v60, %s3050_s2 }
 0x11f   :  { %v849_v21 = vld [vmem:[#allocation2 + $0x58] sm:$0xff] }
 0x120   :  { %880 = vrot.lane.b32.xlu1 %v848_v20, %s3050_s2  ;;  %884 = vrot.lane.b32.xlu0 %v849_v21, %s3050_s2 }
 0x124   :  { %872 = vrot.lane.b32.xlu1 %v846_v0, %s3050_s2  ;;  %870 = vrot.lane.b32.xlu0 %v817_v62, %s3050_s2 }
 0x128   :  { %868 = vrot.lane.b32.xlu1 %v845_v6, %s3050_s2  ;;  %866 = vrot.lane.b32.xlu0 %v815_v22, %s3050_s2 }
 0x12c   :  { %864 = vrot.lane.b32.xlu1 %v844_v40, %s3050_s2  ;;  %862 = vrot.lane.b32.xlu0 %v813_v15, %s3050_s2 }
 0x180   :  { %v875_v41 = vpop.permute.xlu0 %874 }
 0x188   :  { %v883_v44 = vpop.permute.xlu0 %882 }
 0x18a   :  { %v877_v48 = vpop.permute.xlu1 %876 }
 0x18b   :  { %v890_v57 = vsel %vm886_vm4, %v875_v41, %v877_v48 }
 0x18c   :  { %v902_v61 = vmax.f32 %v819_v7, %v890_v57  ;;  %v2544_v7 = vld [vmem:[%s4098_s5 + $0xa8] sm:$0xff] }
 0x18d   :  { %2855 = vmatprep.subr.mxu0 %v2544_v7 }
 0x18e   :  { %v879_v23 = vpop.permute.xlu1 %878  ;;  %2856 = vmatpush3.msra.mxu0 %v2544_v7  ;;  %v2552_v7 = vld [vmem:[%s4098_s5 + $0xc8] sm:$0xff] }
 0x18f   :  { %2857 = vmatprep.subr.mxu0 %v2543_v31 }
 0x190   :  { %2858 = vmatpush3.msra.mxu0 %v2543_v31  ;;  %v2551_v31 = vld [vmem:[%s4098_s5 + $0xc0] sm:$0xff] }
 0x191   :  { %2859 = vmatprep.subr.mxu0 %v2542_v9 }
 0x192   :  { %v881_v43 = vpop.permute.xlu1 %880  ;;  %v885_v51 = vpop.permute.xlu0 %884  ;;  %2860 = vmatpush3.msra.mxu0 %v2542_v9  ;;  %v2590_v9 = vld [vmem:[%s4098_s5 + $0x1d8] sm:$0xff] }
 0x193   :  { %v891_v52 = vsel %vm886_vm4, %v879_v23, %v881_v43  ;;  %v892_v55 = vsel %vm886_vm4, %v883_v44, %v885_v51  ;;  %2861 = vmatprep.subr.mxu0 %v2541_v54 }
 0x194   :  { %v904_v56 = vmax.f32 %v823_v19, %v892_v55  ;;  %v903_v25 = vmax.f32 %v821_v60, %v891_v52  ;;  %2862 = vmatpush3.msra.mxu0 %v2541_v54  ;;  %v1103_v60 = vld [vmem:[%s4098_s5 + $0x20] sm:$0xff] }
 0x195   :  { %2863 = vmatprep.subr.mxu0 %v2540_v13  ;;  %v2535_v19 = vld [vmem:[%s4098_s5 + $0x60] sm:$0xff] }
 0x196   :  { %v873_v45 = vpop.permute.xlu1 %872  ;;  %2810 = vmatpush3.msra.mxu1 %v904_v56  ;;  %v871_v49 = vpop.permute.xlu0 %870  ;;  %2864 = vmatpush3.msra.mxu0 %v2540_v13  ;;  %v2589_v13 = vld [vmem:[%s4098_s5 + $0x1d0] sm:$0xff] }
 0x197   :  { %v889_v58 = vsel %vm886_vm4, %v871_v49, %v873_v45  ;;  %2811 = vmatprep.subr.mxu1 %v3049_v18  ;;  %2865 = vmatprep.subr.mxu0 %v2539_v32 }
 0x198   :  { %2812 = vmatpush3.msra.mxu1 %v903_v25  ;;  %v901_v26 = vmax.f32 %v817_v62, %v889_v58  ;;  %v905_v62 = vld [vmem:[%s4096_s3] sm:$0xff]  ;;  %2866 = vmatpush3.msra.mxu0 %v2539_v32 }
 0x199   :  { %2813 = vmatprep.subr.mxu1 %v3049_v18  ;;  %2867 = vmatprep.subr.mxu0 %v2538_v33  ;;  %v2587_v32 = vld [vmem:[%s4098_s5 + $0x1c0] sm:$0xff] }
 0x19a   :  { %v869_v27 = vpop.permute.xlu1 %868  ;;  %2814 = vmatpush3.msra.mxu1 %v902_v61  ;;  %v867_v47 = vpop.permute.xlu0 %866  ;;  %2868 = vmatpush3.msra.mxu0 %v2538_v33  ;;  %v2585_v33 = vld [vmem:[%s4098_s5 + $0x1b0] sm:$0xff] }
 0x19b   :  { %v888_v59 = vsel %vm886_vm4, %v867_v47, %v869_v27  ;;  %2815 = vmatprep.subr.mxu1 %v3049_v18  ;;  %2869 = vmatprep.subr.mxu0 %v2537_v16 }
 0x19c   :  { %v900_v63 = vmax.f32 %v815_v22, %v888_v59  ;;  %2816 = vmatpush3.msra.mxu1 %v901_v26  ;;  %v999_v22 = vld [vmem:[%s4097_s4 + $0x8] sm:$0xff]  ;;  %2870 = vmatpush3.msra.mxu0 %v2537_v16  ;;  %v2583_v16 = vld [vmem:[%s4098_s5 + $0x1a0] sm:$0xff] }
 0x19d   :  { %2817 = vmatprep.subr.mxu1 %v3049_v18  ;;  %2871 = vmatprep.subr.mxu0 %v2536_v36  ;;  %v2560_v59 = vld [vmem:[%s4098_s5 + $0x108] sm:$0xff] }
 0x19e   :  { %v865_v1 = vpop.permute.xlu1 %864  ;;  %2818 = vmatpush3.msra.mxu1 %v900_v63  ;;  %v863_v2 = vpop.permute.xlu0 %862  ;;  %2872 = vmatpush3.msra.mxu0 %v2536_v36  ;;  %v2581_v36 = vld [vmem:[%s4098_s5 + $0x190] sm:$0xff] }
 0x19f   :  { %v887_v3 = vsel %vm886_vm4, %v863_v2, %v865_v1  ;;  %2819 = vmatprep.subr.mxu1 %v3049_v18  ;;  %2873 = vmatprep.subr.mxu0 %v2535_v19  ;;  %v2559_v1 = vld [vmem:[%s4098_s5 + $0x100] sm:$0xff] }
 0x1a0   :  { %v899_v24 = vmax.f32 %v813_v15, %v887_v3  ;;  %v998_v15 = vld [vmem:[%s4097_s4] sm:$0xff]  ;;  %2874 = vmatpush3.msra.mxu0 %v2535_v19  ;;  %v2558_v3 = vld [vmem:[%s4098_s5 + $0xf8] sm:$0xff] }
 0x1a1   :  { %2905 = vmatprep.subr.mxu0 %v2562_v38  ;;  %v2573_v2 = vld [vmem:[%s4098_s5 + $0x160] sm:$0xff] }
 0x1a2   :  { %2820 = vmatpush3.msra.mxu1 %v899_v24  ;;  %v2579_v19 = vld [vmem:[%s4098_s5 + $0x180] sm:$0xff] }
 0x1a3   :  { %2822 = vmatmul.mubr.msk.f32.vlgmr.msra.gmra.mxu1 %vm908_vm5, %v905_v62  ;;  %2830 = vmatprep.subr.mxu1 %v3049_v18  ;;  %v2557_v62 = vld [vmem:[%s4098_s5 + $0xf0] sm:$0xff] }
 0x1a4   :  { %2831 = vmatpush3.msra.mxu1 %v904_v56  ;;  %2824 = vmatprep.mubr.msk.f32.mxu1 %vm3051_vm3, %v3049_v18 }
 0x1a5   :  { %2832 = vmatprep.subr.mxu1 %v3049_v18 }
 0x1a6   :  { %2833 = vmatpush3.msra.mxu1 %v903_v25 }
 0x1a7   :  { %2825 = vmatmul.mubr.msk.f32.gmra.mxu1 %vm908_vm5, %v906_v42  ;;  %2834 = vmatprep.subr.mxu1 %v3049_v18  ;;  %v2571_v42 = vld [vmem:[%s4098_s5 + $0x150] sm:$0xff] }
 0x1a8   :  { %2835 = vmatpush3.msra.mxu1 %v902_v61  ;;  %2827 = vmatprep.mubr.msk.f32.mxu1 %vm3051_vm3, %v3049_v18  ;;  %v2561_v61 = vld [vmem:[%s4098_s5 + $0x110] sm:$0xff] }
 0x1a9   :  { %2836 = vmatprep.subr.mxu1 %v3049_v18 }
 0x1aa   :  { %2837 = vmatpush3.msra.mxu1 %v901_v26  ;;  %v2575_v26 = vld [vmem:[%s4098_s5 + $0x170] sm:$0xff] }
 0x1ab   :  { %2828 = vmatmul.mubr.msk.f32.gmra.mxu1 %vm908_vm5, %v907_v12  ;;  %2838 = vmatprep.subr.mxu1 %v3049_v18  ;;  %v2556_v12 = vld [vmem:[%s4098_s5 + $0xe8] sm:$0xff] }
 0x1ac   :  { %2839 = vmatpush3.msra.mxu1 %v900_v63  ;;  %2842 = vmatprep.mubr.msk.f32.mxu1 %vm3051_vm3, %v3049_v18  ;;  %v2574_v63 = vld [vmem:[%s4098_s5 + $0x168] sm:$0xff] }
 0x1ad   :  { %2840 = vmatprep.subr.mxu1 %v3049_v18 }
 0x1ae   :  { %2841 = vmatpush3.msra.mxu1 %v899_v24  ;;  %v2572_v24 = vld [vmem:[%s4098_s5 + $0x158] sm:$0xff] }
 0x1af   :  { %2843 = vmatmul.mubr.msk.f32.vlgmr.msra.gmra.mxu1 %vm908_vm5, %v998_v15  ;;  %2878 = vmatprep.subr.mxu1 %v1110_v50  ;;  %v2570_v15 = vld [vmem:[%s4098_s5 + $0x148] sm:$0xff] }
 0x1b0   :  { %2845 = vmatprep.mubr.msk.f32.mxu1 %vm3051_vm3, %v3049_v18  ;;  %2879 = vmatpush3.msra.mxu1 %v1110_v50  ;;  %v2568_v50 = vld [vmem:[%s4098_s5 + $0x138] sm:$0xff] }
 0x1b1   :  { %2880 = vmatprep.subr.mxu1 %v1109_v5 }
 0x1b2   :  { %2881 = vmatpush3.msra.mxu1 %v1109_v5  ;;  %v2567_v5 = vld [vmem:[%s4098_s5 + $0x130] sm:$0xff] }
 0x1b3   :  { %2846 = vmatmul.mubr.msk.f32.gmra.mxu1 %vm908_vm5, %v999_v22  ;;  %2882 = vmatprep.subr.mxu1 %v1108_v30  ;;  %v2555_v22 = vld [vmem:[%s4098_s5 + $0xe0] sm:$0xff] }
 0x1b4   :  { %2848 = vmatprep.mubr.msk.f32.mxu1 %vm3051_vm3, %v3049_v18  ;;  %2883 = vmatpush3.msra.mxu1 %v1108_v30  ;;  %v2566_v30 = vld [vmem:[%s4098_s5 + $0x128] sm:$0xff] }
 0x1b5   :  { %2884 = vmatprep.subr.mxu1 %v1107_v8 }
 0x1b6   :  { %2885 = vmatpush3.msra.mxu1 %v1107_v8  ;;  %v2565_v8 = vld [vmem:[%s4098_s5 + $0x120] sm:$0xff] }
 0x1b7   :  { %2849 = vmatmul.mubr.msk.f32.gmra.mxu1 %vm908_vm5, %v1000_v28  ;;  %2886 = vmatprep.subr.mxu1 %v1106_v10  ;;  %v2569_v28 = vld [vmem:[%s4098_s5 + $0x140] sm:$0xff] }
 0x1b8   :  { %2887 = vmatpush3.msra.mxu1 %v1106_v10 }
 0x1b9   :  { %2888 = vmatprep.subr.mxu1 %v1105_v11 }
 0x1ba   :  { %2889 = vmatpush3.msra.mxu1 %v1105_v11 }
 0x1bb   :  { %2890 = vmatprep.subr.mxu1 %v1104_v14 }
 0x1bc   :  { %2891 = vmatpush3.msra.mxu1 %v1104_v14  ;;  %v2588_v14 = vld [vmem:[%s4098_s5 + $0x1c8] sm:$0xff] }
 0x1bd   :  { %2892 = vmatprep.subr.mxu1 %v1103_v60 }
 0x1be   :  { %2893 = vmatpush3.msra.mxu1 %v1103_v60  ;;  %v2586_v60 = vld [vmem:[%s4098_s5 + $0x1b8] sm:$0xff] }
 0x1bf   :  { %2894 = vmatprep.subr.mxu1 %v1102_v34 }
 0x1c0   :  { %2895 = vmatpush3.msra.mxu1 %v1102_v34  ;;  %v2584_v34 = vld [vmem:[%s4098_s5 + $0x1a8] sm:$0xff] }
 0x1c1   :  { %2896 = vmatprep.subr.mxu1 %v1101_v35 }
 0x1c2   :  { %2897 = vmatpush3.msra.mxu1 %v1101_v35  ;;  %v2582_v35 = vld [vmem:[%s4098_s5 + $0x198] sm:$0xff] }
 0x1c3   :  { %2898 = vmatprep.subr.mxu1 %v1100_v17 }
 0x1c4   :  { %2899 = vmatpush3.msra.mxu1 %v1100_v17  ;;  %v2580_v17 = vld [vmem:[%s4098_s5 + $0x188] sm:$0xff] }
 0x1c5   :  { %2900 = vmatprep.subr.mxu1 %v1099_v37 }
 0x1c6   :  { %2901 = vmatpush3.msra.mxu1 %v1099_v37 }
 0x1c7   :  { %2932 = vmatprep.subr.mxu1 %v2576_v39 }
 0x263   :  { %v984_v20 = vpop.f32.mrf.mxu1 }
 0x265   :  { %v2823_v21 = vpop.f32.mrf.mxu1 }
 0x267   :  { %v989_v0 = vpop.f32.mrf.mxu1 }
 0x269   :  { %v2826_v6 = vpop.f32.mrf.mxu1 }
 0x26b   :  { %v994_v40 = vpop.f32.mrf.mxu1 }
 0x26d   :  { %v2829_v41 = vpop.f32.mrf.mxu1 }
 0x26f   :  { %v1076_v48 = vpop.f32.mrf.mxu1 }
 0x270   :  { %v1090_v23 = vmax.f32 %v984_v20, %v1076_v48 }
 0x271   :  { %v2844_v44 = vpop.f32.mrf.mxu1 }
 0x272   :  { %1094 = vst.msk [vmem:[#allocation3] sm:$0xff] %vm1093_vm6, %v1090_v23 }
 0x273   :  { %v1081_v43 = vpop.f32.mrf.mxu1 }
 0x274   :  { %v1091_v51 = vmax.f32 %v989_v0, %v1081_v43 }
 0x275   :  { %v2847_v52 = vpop.f32.mrf.mxu1 }
 0x276   :  { %1095 = vst.msk [vmem:[#allocation3 + $0x8] sm:$0xff] %vm1093_vm6, %v1091_v51 }
 0x277   :  { %v1086_v55 = vpop.f32.mrf.mxu1 }
 0x278   :  { %v1092_v56 = vmax.f32 %v994_v40, %v1086_v55  ;;  %v2593_v55 = vld [vmem:[%s4099_s6] ss:$0 sm:$0xff] }
 0x279   :  { %v1097_v57 = vld [vmem:[#allocation3] sm:$0xff]  ;;  %v2850_v25 = vpop.f32.mrf.mxu1 }
 0x27a   :  { %1096 = vst.msk [vmem:[#allocation3 + $0x10] sm:$0xff] %vm1093_vm6, %v1092_v56  ;;  %2902 = vmatprep.mubr.msk.f32.mxu1 %vm1093_vm6, %v1097_v57 }
 0x27d   :  { %v1111_v45 = vld [vmem:[#allocation3 + $0x1] sm:$0xff] }
 0x27e   :  { %2875 = vmatprep.mubr.msk.f32.mxu0 %vm1093_vm6, %v1111_v45  ;;  %v1288_v27 = vld [vmem:[#allocation3 + $0x2] sm:$0xff] }
 0x27f   :  { %v1386_v47 = vld [vmem:[#allocation3 + $0x3] sm:$0xff] }
 0x280   :  { %v1484_v11 = vld [vmem:[#allocation3 + $0x4] sm:$0xff] }
 0x281   :  { %v1112_v49 = vld [vmem:[#allocation3 + $0xd] sm:$0xff] }
 0x282   :  { %v1098_v58 = vld [vmem:[#allocation3 + $0xc] sm:$0xff]  ;;  %2876 = vmatmul.mubr.msk.f32.vlgmr.msra.gmra.mxu0 %vm1093_vm6, %v1112_v49 }
 0x283   :  { %2903 = vmatmul.mubr.msk.f32.vlgmr.msra.gmra.mxu1 %vm1093_vm6, %v1098_v58  ;;  %2906 = vmatpush3.msra.mxu0 %v2562_v38  ;;  %v1289_v10 = vld [vmem:[#allocation3 + $0xe] sm:$0xff] }
 0x284   :  { %2933 = vmatpush3.msra.mxu1 %v2576_v39  ;;  %2907 = vmatprep.subr.mxu0 %v2561_v61  ;;  %v1387_v54 = vld [vmem:[#allocation3 + $0xf] sm:$0xff] }
 0x285   :  { %2929 = vmatprep.mubr.msk.f32.mxu0 %vm1093_vm6, %v1288_v27  ;;  %2934 = vmatprep.subr.mxu1 %v2575_v26  ;;  %v1485_v37 = vld [vmem:[#allocation3 + $0x10] sm:$0xff] }
 0x286   :  { %2956 = vmatprep.mubr.msk.f32.mxu1 %vm1093_vm6, %v1386_v47  ;;  %2908 = vmatpush3.msra.mxu0 %v2561_v61 }
 0x287   :  { %2935 = vmatpush3.msra.mxu1 %v2575_v26  ;;  %2909 = vmatprep.subr.mxu0 %v2560_v59 }
 0x288   :  { %2936 = vmatprep.subr.mxu1 %v2574_v63  ;;  %2910 = vmatpush3.msra.mxu0 %v2560_v59 }
 0x289   :  { %2937 = vmatpush3.msra.mxu1 %v2574_v63  ;;  %2911 = vmatprep.subr.mxu0 %v2559_v1 }
 0x28a   :  { %2938 = vmatprep.subr.mxu1 %v2573_v2  ;;  %2912 = vmatpush3.msra.mxu0 %v2559_v1  ;;  %v3053_v1 = vmov 1983009808  }
 0x28b   :  { %2939 = vmatpush3.msra.mxu1 %v2573_v2  ;;  %2913 = vmatprep.subr.mxu0 %v2558_v3  ;;  %v1619_v2 = vunpack.c.l.s4 %v3053_v1  ;;  %v1733_v1 = vld [vmem:[%s4102_s9 + $0x80] sm:$0xff] }
 0x28c   :  { %2940 = vmatprep.subr.mxu1 %v2572_v24  ;;  %2914 = vmatpush3.msra.mxu0 %v2558_v3  ;;  %v1748_v3 = vld [vmem:[%s4102_s9 + $0xf8] sm:$0xff] }
 0x28d   :  { %2941 = vmatpush3.msra.mxu1 %v2572_v24  ;;  %2915 = vmatprep.subr.mxu0 %v2557_v62  ;;  %v1732_v24 = vld [vmem:[%s4102_s9 + $0x78] sm:$0xff] }
 0x28e   :  { %2942 = vmatprep.subr.mxu1 %v2571_v42  ;;  %2916 = vmatpush3.msra.mxu0 %v2557_v62  ;;  %v1747_v62 = vld [vmem:[%s4102_s9 + $0xf0] sm:$0xff] }
 0x28f   :  { %2943 = vmatpush3.msra.mxu1 %v2571_v42  ;;  %2917 = vmatprep.subr.mxu0 %v2556_v12  ;;  %v1731_v42 = vld [vmem:[%s4102_s9 + $0x70] sm:$0xff] }
 0x290   :  { %2944 = vmatprep.subr.mxu1 %v2570_v15  ;;  %2918 = vmatpush3.msra.mxu0 %v2556_v12  ;;  %v1620_v12 = vunpack.c.0.s8 %v1619_v2  ;;  %v1717_v2 = vld [vmem:[%s4102_s9] sm:$0xff] }
 0x291   :  { %2945 = vmatpush3.msra.mxu1 %v2570_v15  ;;  %2919 = vmatprep.subr.mxu0 %v2555_v22  ;;  %v1746_v15 = vld [vmem:[%s4102_s9 + $0xe8] sm:$0xff] }
 0x292   :  { %2946 = vmatprep.subr.mxu1 %v2569_v28  ;;  %2920 = vmatpush3.msra.mxu0 %v2555_v22  ;;  %v1730_v22 = vld [vmem:[%s4102_s9 + $0x68] sm:$0xff] }
 0x293   :  { %2947 = vmatpush3.msra.mxu1 %v2569_v28  ;;  %2921 = vmatprep.subr.mxu0 %v2554_v29  ;;  %v1745_v28 = vld [vmem:[%s4102_s9 + $0xe0] sm:$0xff] }
 0x294   :  { %2948 = vmatprep.subr.mxu1 %v2568_v50  ;;  %2922 = vmatpush3.msra.mxu0 %v2554_v29 }
 0x295   :  { %2949 = vmatpush3.msra.mxu1 %v2568_v50  ;;  %2923 = vmatprep.subr.mxu0 %v2553_v4 }
 0x296   :  { %2950 = vmatprep.subr.mxu1 %v2567_v5  ;;  %2924 = vmatpush3.msra.mxu0 %v2553_v4 }
 0x297   :  { %2951 = vmatpush3.msra.mxu1 %v2567_v5  ;;  %2925 = vmatprep.subr.mxu0 %v2552_v7 }
 0x298   :  { %2952 = vmatprep.subr.mxu1 %v2566_v30  ;;  %2926 = vmatpush3.msra.mxu0 %v2552_v7 }
 0x299   :  { %2953 = vmatpush3.msra.mxu1 %v2566_v30  ;;  %2927 = vmatprep.subr.mxu0 %v2551_v31 }
 0x29a   :  { %2954 = vmatprep.subr.mxu1 %v2565_v8  ;;  %2928 = vmatpush3.msra.mxu0 %v2551_v31 }
 0x29b   :  { %2955 = vmatpush3.msra.mxu1 %v2565_v8  ;;  %2930 = vmatmul.mubr.msk.f32.vlgmr.msra.gmra.mxu0 %vm1093_vm6, %v1289_v10 }
 0x29c   :  { %2957 = vmatmul.mubr.msk.f32.vlgmr.msra.gmra.mxu1 %vm1093_vm6, %v1387_v54  ;;  %2959 = vmatprep.subr.mxu0 %v2590_v9  ;;  %v3792_v54 = vsub.s32 %v1620_v12, %v3434_v46  ;;  %v1729_v46 = vld [vmem:[%s4102_s9 + $0x60] sm:$0xff] }
 0x29d   :  { %2983 = vmatprep.mubr.msk.f32.mxu0 %vm1093_vm6, %v1484_v11  ;;  %2960 = vmatpush3.msra.mxu0 %v2590_v9 }
 0x29e   :  { %2961 = vmatprep.subr.mxu0 %v2589_v13  ;;  %2688 = vmatprep.subr.mxu1 %v1748_v3 }
 0x29f   :  { %2962 = vmatpush3.msra.mxu0 %v2589_v13  ;;  %2689 = vmatpush3.msra.mxu1 %v1732_v24 }
 0x2a0   :  { %2963 = vmatprep.subr.mxu0 %v2588_v14  ;;  %2690 = vmatprep.subr.mxu1 %v1747_v62 }
 0x2a1   :  { %2964 = vmatpush3.msra.mxu0 %v2588_v14  ;;  %2691 = vmatpush3.msra.mxu1 %v1731_v42 }
 0x2a2   :  { %2965 = vmatprep.subr.mxu0 %v2587_v32  ;;  %2692 = vmatprep.subr.mxu1 %v1746_v15 }
 0x2a3   :  { %2966 = vmatpush3.msra.mxu0 %v2587_v32  ;;  %2693 = vmatpush3.msra.mxu1 %v1730_v22 }
 0x2a4   :  { %2967 = vmatprep.subr.mxu0 %v2586_v60  ;;  %2694 = vmatprep.subr.mxu1 %v1745_v28 }
 0x2a5   :  { %2968 = vmatpush3.msra.mxu0 %v2586_v60  ;;  %2695 = vmatpush3.msra.mxu1 %v1729_v46 }
 0x2a6   :  { %2969 = vmatprep.subr.mxu0 %v2585_v33 }
 0x2a7   :  { %2970 = vmatpush3.msra.mxu0 %v2585_v33 }
 0x2a8   :  { %2971 = vmatprep.subr.mxu0 %v2584_v34 }
 0x2a9   :  { %2972 = vmatpush3.msra.mxu0 %v2584_v34 }
 0x2aa   :  { %2973 = vmatprep.subr.mxu0 %v2583_v16 }
 0x2ab   :  { %2974 = vmatpush3.msra.mxu0 %v2583_v16 }
 0x2ac   :  { %2975 = vmatprep.subr.mxu0 %v2582_v35 }
 0x2ad   :  { %2976 = vmatpush3.msra.mxu0 %v2582_v35 }
 0x2ae   :  { %2977 = vmatprep.subr.mxu0 %v2581_v36 }
 0x2af   :  { %2978 = vmatpush3.msra.mxu0 %v2581_v36 }
 0x2b0   :  { %2979 = vmatprep.subr.mxu0 %v2580_v17 }
 0x2b1   :  { %2980 = vmatpush3.msra.mxu0 %v2580_v17 }
 0x2b2   :  { %2981 = vmatprep.subr.mxu0 %v2579_v19 }
 0x2b3   :  { %2982 = vmatpush3.msra.mxu0 %v2579_v19 }
 0x2b4   :  { %2984 = vmatmul.mubr.msk.f32.vlgmr.msra.gmra.mxu0 %vm1093_vm6, %v1485_v37  ;;  %2723 = vmatprep.subr.mxu0 %v1748_v3 }
 0x2b5   :  { %2724 = vmatpush3.msra.mxu0 %v1732_v24 }
 0x2b6   :  { %2725 = vmatprep.subr.mxu0 %v1747_v62 }
 0x2b7   :  { %2726 = vmatpush3.msra.mxu0 %v1731_v42 }
 0x2b8   :  { %2727 = vmatprep.subr.mxu0 %v1746_v15 }
 0x2b9   :  { %2728 = vmatpush3.msra.mxu0 %v1730_v22 }
 0x2ba   :  { %2729 = vmatprep.subr.mxu0 %v1745_v28 }
 0x2bb   :  { %2730 = vmatpush3.msra.mxu0 %v1729_v46 }
 0x342   :  { %v2877_v38 = vpop.f32.mrf.mxu0 }
 0x343   :  { %v2904_v39 = vpop.f32.mrf.mxu1 }
 0x344   :  { %v1198_v20 = vpop.f32.mrf.mxu0  ;;  %v1285_v6 = vadd.f32 %v2904_v39, %v2877_v38  ;;  %v1744_v38 = vld [vmem:[%s4102_s9 + $0xd8] sm:$0xff] }
 0x345   :  { %v1279_v0 = vpop.f32.mrf.mxu1  ;;  %2696 = vmatprep.subr.mxu1 %v1744_v38  ;;  %2731 = vmatprep.subr.mxu0 %v1744_v38 }
 0x346   :  { %v1280_v41 = vadd.f32 %v1279_v0, %v1198_v20  ;;  %v1728_v0 = vld [vmem:[%s4102_s9 + $0x58] sm:$0xff] }
 0x347   :  { %2697 = vmatpush3.msra.mxu1 %v1728_v0  ;;  %2732 = vmatpush3.msra.mxu0 %v1728_v0 }
 0x35b   :  { %v2931_v21 = vpop.f32.mrf.mxu0 }
 0x35c   :  { %v1385_v48 = vadd.f32 %v2931_v21, %v1285_v6  ;;  %v2958_v23 = vpop.f32.mrf.mxu1  ;;  %v1743_v6 = vld [vmem:[%s4102_s9 + $0xd0] sm:$0xff] }
 0x35d   :  { %v1375_v40 = vpop.f32.mrf.mxu0  ;;  %2698 = vmatprep.subr.mxu1 %v1743_v6  ;;  %2733 = vmatprep.subr.mxu0 %v1743_v6 }
 0x35e   :  { %v1384_v44 = vadd.f32 %v1375_v40, %v1280_v41  ;;  %v1483_v43 = vadd.f32 %v2958_v23, %v1385_v48  ;;  %v1473_v51 = vpop.f32.mrf.mxu1  ;;  %v1727_v40 = vld [vmem:[%s4102_s9 + $0x50] sm:$0xff]  ;;  %v1742_v41 = vld [vmem:[%s4102_s9 + $0xc8] sm:$0xff] }
 0x35f   :  { %v1726_v23 = vld [vmem:[%s4102_s9 + $0x48] sm:$0xff]  ;;  %2699 = vmatpush3.msra.mxu1 %v1727_v40  ;;  %2734 = vmatpush3.msra.mxu0 %v1727_v40 }
 0x360   :  { %v1482_v56 = vadd.f32 %v1473_v51, %v1384_v44  ;;  %2700 = vmatprep.subr.mxu1 %v1742_v41  ;;  %v1725_v51 = vld [vmem:[%s4102_s9 + $0x40] sm:$0xff]  ;;  %2735 = vmatprep.subr.mxu0 %v1742_v41 }
 0x361   :  { %2701 = vmatpush3.msra.mxu1 %v1726_v23  ;;  %2736 = vmatpush3.msra.mxu0 %v1726_v23 }
 0x374   :  { %v2985_v52 = vpop.f32.mrf.mxu0 }
 0x375   :  { %v1581_v57 = vadd.f32 %v2985_v52, %v1483_v43  ;;  %v1741_v43 = vld [vmem:[%s4102_s9 + $0xc0] sm:$0xff]  ;;  %v1740_v52 = vld [vmem:[%s4102_s9 + $0xb8] sm:$0xff] }
 0x376   :  { %v1571_v25 = vpop.f32.mrf.mxu0  ;;  %2702 = vmatprep.subr.mxu1 %v1741_v43  ;;  %2737 = vmatprep.subr.mxu0 %v1741_v43 }
 0x377   :  { %v1590_v45 = vadd.f32 %v2593_v55, %v1581_v57  ;;  %v1580_v49 = vadd.f32 %v1571_v25, %v1482_v56  ;;  %2703 = vmatpush3.msra.mxu1 %v1725_v51  ;;  %v1739_v56 = vld [vmem:[%s4102_s9 + $0xb0] sm:$0xff]  ;;  %v1738_v25 = vld [vmem:[%s4102_s9 + $0xa8] sm:$0xff]  ;;  %2738 = vmatpush3.msra.mxu0 %v1725_v51 }
 0x378   :  { %2704 = vmatprep.subr.mxu1 %v1740_v52  ;;  %v1723_v57 = vld [vmem:[%s4102_s9 + $0x30] sm:$0xff]  ;;  %2739 = vmatprep.subr.mxu0 %v1740_v52 }
 0x379   :  { %v1592_v58 = vmax.f32 %v1590_v45, 0.0  ;;  %v1589_v61 = vadd.f32 %v2593_v55, %v1580_v49  ;;  %v1724_v55 = vld [vmem:[%s4102_s9 + $0x38] sm:$0xff]  ;;  %v1722_v45 = vld [vmem:[%s4102_s9 + $0x28] sm:$0xff]  ;;  %v1737_v49 = vld [vmem:[%s4102_s9 + $0xa0] sm:$0xff] }
 0x37a   :  { %2705 = vmatpush3.msra.mxu1 %v1724_v55  ;;  %2740 = vmatpush3.msra.mxu0 %v1724_v55 }
 0x37b   :  { %v1591_v26 = vmax.f32 %v1589_v61, 0.0  ;;  %1601 = vrot.lane.b32.xlu1 %v1592_v58, %s3052_s19  ;;  %2706 = vmatprep.subr.mxu1 %v1739_v56  ;;  %v1736_v61 = vld [vmem:[%s4102_s9 + $0x98] sm:$0xff] }
 0x37c   :  { %2707 = vmatpush3.msra.mxu1 %v1723_v57  ;;  %2741 = vmatprep.subr.mxu0 %v1739_v56 }
 0x37d   :  { %1599 = vrot.lane.b32.xlu0 %v1591_v26, %s3052_s19  ;;  %2708 = vmatprep.subr.mxu1 %v1738_v25 }
 0x37e   :  { %2709 = vmatpush3.msra.mxu1 %v1722_v45  ;;  %2742 = vmatpush3.msra.mxu0 %v1723_v57 }
 0x37f   :  { %2710 = vmatprep.subr.mxu1 %v1737_v49  ;;  %2743 = vmatprep.subr.mxu0 %v1738_v25 }
 0x380   :  { %2744 = vmatpush3.msra.mxu0 %v1722_v45 }
 0x381   :  { %2745 = vmatprep.subr.mxu0 %v1737_v49 }
 0x3ed   :  { %v1602_v27 = vpop.permute.xlu1 %1601 }
 0x3ee   :  { %v1606_v47 = vmax.f32 %v1592_v58, %v1602_v27  ;;  %v1721_v58 = vld [vmem:[%s4102_s9 + $0x20] sm:$0xff]  ;;  %v1735_v27 = vld [vmem:[%s4102_s9 + $0x90] sm:$0xff] }
 0x3ef   :  { %v1600_v59 = vpop.permute.xlu0 %1599  ;;  %2711 = vmatpush3.msra.mxu1 %v1721_v58  ;;  %2746 = vmatpush3.msra.mxu0 %v1721_v58 }
 0x3f0   :  { %1608 = vst.msk [vmem:[#allocation5 + $0x8] sm:$0xff] %vm826_vm2, %v1606_v47  ;;  %v1605_v63 = vmax.f32 %v1591_v26, %v1600_v59  ;;  %v1720_v26 = vld [vmem:[%s4102_s9 + $0x18] sm:$0xff]  ;;  %2712 = vmatprep.subr.mxu1 %v1736_v61  ;;  %v1719_v47 = vld [vmem:[%s4102_s9 + $0x10] sm:$0xff]  ;;  %v1734_v59 = vld [vmem:[%s4102_s9 + $0x88] sm:$0xff]  ;;  %2747 = vmatprep.subr.mxu0 %v1736_v61 }
 0x3f1   :  { %2713 = vmatpush3.msra.mxu1 %v1720_v26  ;;  %2748 = vmatpush3.msra.mxu0 %v1720_v26 }
 0x3f2   :  { %1607 = vst.msk [vmem:[#allocation5] sm:$0xff] %vm826_vm2, %v1605_v63  ;;  %2714 = vmatprep.subr.mxu1 %v1735_v27  ;;  %v1718_v63 = vld [vmem:[%s4102_s9 + $0x8] sm:$0xff]  ;;  %2749 = vmatprep.subr.mxu0 %v1735_v27 }
 0x3f3   :  { %2715 = vmatpush3.msra.mxu1 %v1719_v47  ;;  %2750 = vmatpush3.msra.mxu0 %v1719_v47 }
 0x3f4   :  { %2716 = vmatprep.subr.mxu1 %v1734_v59  ;;  %2751 = vmatprep.subr.mxu0 %v1734_v59 }
 0x3f5   :  { %2717 = vmatpush3.msra.mxu1 %v1718_v63  ;;  %2752 = vmatpush3.msra.mxu0 %v1718_v63 }
 0x3f6   :  { %2718 = vmatprep.subr.mxu1 %v1733_v1  ;;  %2753 = vmatprep.subr.mxu0 %v1733_v1 }
 0x3f7   :  { %v1672_v29 = vld [vmem:[#allocation5 + $0xe] sm:$0x1]  ;;  %v1673_v50 = vld [vmem:[#allocation5 + $0xf] sm:$0x1]  ;;  %v1653_v4 = vld [vmem:[#allocation5 + $0xa] sm:$0x1]  ;;  %2719 = vmatpush3.msra.mxu1 %v1717_v2  ;;  %2754 = vmatpush3.msra.mxu0 %v1717_v2 }
 0x3f8   :  { %v1654_v5 = vld [vmem:[#allocation5 + $0xb] sm:$0x1]  ;;  %v1668_v7 = vld [vmem:[#allocation5 + $0xc] sm:$0x1]  ;;  %v1669_v30 = vld [vmem:[#allocation5 + $0xd] sm:$0x1]  ;;  %v1674_v17 = vmax.f32 %v1672_v29, %v1673_v50  ;;  %2986 = vmatprep.subr.mxu0 %v3049_v18 }
 0x3f9   :  { %v1634_v31 = vld [vmem:[#allocation5 + $0x6] sm:$0x1]  ;;  %v1635_v8 = vld [vmem:[#allocation5 + $0x7] sm:$0x1]  ;;  %v1614_v9 = vld [vmem:[#allocation5 + $0x2] sm:$0x1]  ;;  %v1670_v10 = vmax.f32 %v1668_v7, %v1669_v30  ;;  %v1655_v20 = vmax.f32 %v1653_v4, %v1654_v5 }
 0x3fa   :  { %v1636_v11 = vmax.f32 %v1634_v31, %v1635_v8  ;;  %v1615_v13 = vld [vmem:[#allocation5 + $0x3] sm:$0x1]  ;;  %v1630_v14 = vld [vmem:[#allocation5 + $0x4] sm:$0x1]  ;;  %v1631_v32 = vld [vmem:[#allocation5 + $0x5] sm:$0x1]  ;;  %v1682_v48 = vrot.slane %v1674_v17, %v3792_v54 }
 0x3fb   :  { %v1616_v60 = vmax.f32 %v1614_v9, %v1615_v13  ;;  %v1632_v33 = vmax.f32 %v1630_v14, %v1631_v32  ;;  %v1609_v34 = vld [vmem:[#allocation5] sm:$0x1]  ;;  %v1610_v16 = vld [vmem:[#allocation5 + $0x1] sm:$0x1]  ;;  %1671 = vst.msk [vmem:[#allocation6 + $0x3] sm:$0x1] %vm1612_vm7, %v1670_v10  ;;  %v1663_v44 = vrot.slane %v1655_v20, %v3792_v54 }
 0x3fc   :  { %v1649_v35 = vld [vmem:[#allocation5 + $0x8] sm:$0x1]  ;;  %v1644_v36 = vrot.slane %v1636_v11, %v3792_v54  ;;  %v1611_v19 = vmax.f32 %v1609_v34, %v1610_v16  ;;  %v1650_v37 = vld [vmem:[#allocation5 + $0x9] sm:$0x1]  ;;  %v1821_v34 = vld [vmem:[%s4103_s10 + $0x10] sm:$0xff] }
 0x3fd   :  { %v1624_v39 = vrot.slane %v1616_v60, %v3792_v54  ;;  %1633 = vst.msk [vmem:[#allocation6 + $0x2] sm:$0x1] %vm1612_vm7, %v1632_v33  ;;  %v1651_v21 = vmax.f32 %v1649_v35, %v1650_v37  ;;  %v1822_v33 = vld [vmem:[%s4103_s10 + $0x18] sm:$0xff]  ;;  %v1820_v16 = vld [vmem:[%s4103_s10 + $0x8] sm:$0xff]  ;;  %v1819_v35 = vld [vmem:[%s4103_s10] sm:$0xff] }
 0x3fe   :  { %1645 = vrot.lane.b32.xlu1 %v1644_v36, %s3052_s19  ;;  %1613 = vst.msk [vmem:[#allocation6] sm:$0x1] %vm1612_vm7, %v1611_v19  ;;  %1855 = vmatprep.subr.mxu1 %v1822_v33  ;;  %v2017_v2 = vld [vmem:[%s4100_s7] sm:$0x1] }
 0x3ff   :  { %1625 = vrot.lane.b32.xlu0 %v1624_v39, %s3052_s19  ;;  %1652 = vst.msk [vmem:[#allocation6 + $0x1] sm:$0x1] %vm1612_vm7, %v1651_v21 }
 0x402   :  { %1683 = vrot.lane.b32.xlu1 %v1682_v48, %s3052_s19 }
 0x403   :  { %1664 = vrot.lane.b32.xlu0 %v1663_v44, %s3052_s19 }
 0x470   :  { %v1646_v3 = vpop.permute.xlu1 %1645 }
 0x471   :  { %1648 = vst.msk [vmem:[#allocation6 + $0x2] sm:$0x1] %vm1628_vm8, %v1646_v3  ;;  %v1626_v24 = vpop.permute.xlu0 %1625 }
 0x472   :  { %1629 = vst.msk [vmem:[#allocation6] sm:$0x1] %vm1628_vm8, %v1626_v24 }
 0x474   :  { %v1684_v62 = vpop.permute.xlu1 %1683 }
 0x475   :  { %1686 = vst.msk [vmem:[#allocation6 + $0x3] sm:$0x1] %vm1628_vm8, %v1684_v62  ;;  %v1665_v42 = vpop.permute.xlu0 %1664  ;;  %v2093_v62 = vld [vmem:[%s4101_s8] sm:$0x1] }
 0x476   :  { %1667 = vst.msk [vmem:[#allocation6 + $0x1] sm:$0x1] %vm1628_vm8, %v1665_v42  ;;  %v2239_v42 = vld [vmem:[%s4104_s11 + $0xf8] sm:$0xff] }
 0x47d   :  { %v1687_v12 = vld [vmem:[#allocation6] sm:$0xf] }
 0x47e   :  { %v1695_v15 = vrot.slane %v1687_v12, %v3792_v54 }
 0x480   :  { %v1696_v22 = vcombine.high %v1695_v15, %v1695_v15  ;;  %v1700_v28 = vsel %vm1699_vm9, %v1695_v15, 0.0  ;;  %v2238_v15 = vld [vmem:[%s4104_s11 + $0xf0] sm:$0xff] }
 0x481   :  { %v1701_v29 = vrot.slane %v1700_v28, 4 }
 0x482   :  { %v1707_v50 = vsel %vm1699_vm9, %v1696_v22, 0.0  ;;  %v2222_v22 = vld [vmem:[%s4104_s11 + $0x70] sm:$0xff] }
 0x483   :  { %v1708_v4 = vrot.slane %v1707_v50, 4  ;;  %v1702_v5 = vadd.f32 %v1701_v29, %v1700_v28  ;;  %v2237_v28 = vld [vmem:[%s4104_s11 + $0xe8] sm:$0xff] }
 0x484   :  { %v2221_v29 = vld [vmem:[%s4104_s11 + $0x68] sm:$0xff] }
 0x485   :  { %v1709_v7 = vadd.f32 %v1708_v4, %v1707_v50  ;;  %v1703_v30 = vrot.slane %v1702_v5, 2  ;;  %v2236_v50 = vld [vmem:[%s4104_s11 + $0xe0] sm:$0xff] }
 0x486   :  { %v2220_v4 = vld [vmem:[%s4104_s11 + $0x60] sm:$0xff] }
 0x487   :  { %v1710_v31 = vrot.slane %v1709_v7, 2  ;;  %v1704_v8 = vadd.f32 %v1703_v30, %v1702_v5  ;;  %v2235_v5 = vld [vmem:[%s4104_s11 + $0xd8] sm:$0xff]  ;;  %v2234_v30 = vld [vmem:[%s4104_s11 + $0xd0] sm:$0xff] }
 0x489   :  { %v1711_v9 = vadd.f32 %v1710_v31, %v1709_v7  ;;  %v1705_v10 = vrot.slane %v1704_v8, 1  ;;  %v2219_v7 = vld [vmem:[%s4104_s11 + $0x58] sm:$0xff]  ;;  %v2218_v31 = vld [vmem:[%s4104_s11 + $0x50] sm:$0xff] }
 0x48b   :  { %v1712_v11 = vrot.slane %v1711_v9, 1  ;;  %v1706_v13 = vadd.f32 %v1705_v10, %v1704_v8  ;;  %v2233_v8 = vld [vmem:[%s4104_s11 + $0xc8] sm:$0xff]  ;;  %v2232_v10 = vld [vmem:[%s4104_s11 + $0xc0] sm:$0xff] }
 0x48d   :  { %v1713_v14 = vadd.f32 %v1712_v11, %v1711_v9  ;;  %v1715_v60 = vmul.f32 0.5, %v1706_v13  ;;  %v2217_v9 = vld [vmem:[%s4104_s11 + $0x48] sm:$0xff]  ;;  %v2216_v11 = vld [vmem:[%s4104_s11 + $0x40] sm:$0xff]  ;;  %v2231_v13 = vld [vmem:[%s4104_s11 + $0xb8] sm:$0xff] }
 0x48f   :  { %v1716_v32 = vmul.f32 0.5, %v1713_v14  ;;  %v2215_v14 = vld [vmem:[%s4104_s11 + $0x38] sm:$0xff] }
 0x491   :  { %1813 = vmatprep.mubr.f32.mxu1 %v1716_v32  ;;  %v2230_v32 = vld [vmem:[%s4104_s11 + $0xb0] sm:$0xff] }
 0x492   :  { %1814 = vmatmul.mubr.f32.vlgmr.msra.gmra.mxu1 %v1715_v60  ;;  %v2214_v60 = vld [vmem:[%s4104_s11 + $0x30] sm:$0xff] }
 0x493   :  { %1891 = vmatprep.mubr.f32.mxu1 %v3049_v18  ;;  %1856 = vmatpush1.msra.mxu1 %v1821_v34 }
 0x494   :  { %1857 = vmatprep.subr.mxu1 %v1820_v16 }
 0x495   :  { %1858 = vmatpush1.msra.mxu1 %v1819_v35 }
 0x496   :  { %2050 = vmatprep.subr.mxu1 %v1822_v33 }
 0x552   :  { %v2720_v36 = vpop.f32.mrf.mxu1 }
 0x554   :  { %v2721_v17 = vpop.f32.mrf.mxu1 }
 0x555   :  { %v2722_v19 = vadd.f32 %v2721_v17, %v2720_v36  ;;  %v2227_v36 = vld [vmem:[%s4104_s11 + $0x98] sm:$0xff] }
 0x556   :  { %v2211_v17 = vld [vmem:[%s4104_s11 + $0x18] sm:$0xff] }
 0x557   :  { %2594 = vmatmul.mubr.msk.f32.vlgmr.msra.gmra.mxu1 %vm1823_vm10, %v2722_v19  ;;  %v2226_v19 = vld [vmem:[%s4104_s11 + $0x90] sm:$0xff] }
 0x558   :  { %2051 = vmatpush1.msra.mxu1 %v1821_v34  ;;  %2086 = vmatprep.mubr.f32.mxu1 %v3049_v18 }
 0x559   :  { %2052 = vmatprep.subr.mxu1 %v1820_v16 }
 0x55a   :  { %2053 = vmatpush1.msra.mxu1 %v1819_v35 }
 0x55b   :  { %2125 = vmatprep.subr.mxu1 %v1822_v33  ;;  %v2229_v33 = vld [vmem:[%s4104_s11 + $0xa8] sm:$0xff] }
 0x617   :  { %v1893_v37 = vpop.f32.mrf.mxu1 }
 0x618   :  { %v1901_v38 = vrot.slane %v1893_v37, %v3437_v53  ;;  %v2210_v37 = vld [vmem:[%s4104_s11 + $0x10] sm:$0xff] }
 0x619   :  { %v1895_v46 = vpop.f32.mrf.mxu1 }
 0x61a   :  { %v1905_v39 = vrot.slane %v1895_v46, %v3437_v53  ;;  %v2225_v46 = vld [vmem:[%s4104_s11 + $0x88] sm:$0xff] }
 0x61c   :  { %v1908_v20 = vcombine.low %v1901_v38, %v1905_v39  ;;  %v2209_v38 = vld [vmem:[%s4104_s11 + $0x8] sm:$0xff]  ;;  %v2224_v39 = vld [vmem:[%s4104_s11 + $0x80] sm:$0xff] }
 0x61e   :  { %v1915_v21 = vrot.slane %v1908_v20, %v3792_v54  ;;  %v2208_v20 = vld [vmem:[%s4104_s11] sm:$0xff] }
 0x620   :  { %v3903_v0 = vsub.f32 %v1687_v12, %v1915_v21  ;;  %v2223_v12 = vld [vmem:[%s4104_s11 + $0x78] sm:$0xff]  ;;  %v2343_v21 = vld [vmem:[%s4106_s13 + $0x70] sm:$0xff] }
 0x622   :  { %v1918_v6 = vmul.f32 %v3903_v0, %v3903_v0 }
 0x624   :  { %v1926_v40 = vrot.slane %v1918_v6, %v3792_v54  ;;  %v2342_v6 = vld [vmem:[%s4106_s13 + $0x68] sm:$0xff] }
 0x626   :  { %v1930_v41 = vsel %vm1699_vm9, %v1926_v40, 0.0  ;;  %v1927_v48 = vcombine.high %v1926_v40, %v1926_v40  ;;  %v2341_v40 = vld [vmem:[%s4106_s13 + $0x60] sm:$0xff] }
 0x627   :  { %v1931_v23 = vrot.slane %v1930_v41, 4 }
 0x628   :  { %v1937_v44 = vsel %vm1699_vm9, %v1927_v48, 0.0  ;;  %v2339_v48 = vld [vmem:[%s4106_s13 + $0x50] sm:$0xff] }
 0x629   :  { %v1938_v43 = vrot.slane %v1937_v44, 4  ;;  %v1932_v51 = vadd.f32 %v1931_v23, %v1930_v41  ;;  %v2340_v41 = vld [vmem:[%s4106_s13 + $0x58] sm:$0xff]  ;;  %v2338_v23 = vld [vmem:[%s4106_s13 + $0x48] sm:$0xff] }
 0x62b   :  { %v1939_v52 = vadd.f32 %v1938_v43, %v1937_v44  ;;  %v1933_v55 = vrot.slane %v1932_v51, 2  ;;  %v2337_v44 = vld [vmem:[%s4106_s13 + $0x40] sm:$0xff]  ;;  %v2336_v43 = vld [vmem:[%s4106_s13 + $0x38] sm:$0xff] }
 0x62d   :  { %v1940_v56 = vrot.slane %v1939_v52, 2  ;;  %v1934_v57 = vadd.f32 %v1933_v55, %v1932_v51  ;;  %v2335_v51 = vld [vmem:[%s4106_s13 + $0x30] sm:$0xff] }
 0x62f   :  { %v1941_v25 = vadd.f32 %v1940_v56, %v1939_v52  ;;  %v1935_v45 = vrot.slane %v1934_v57, 1  ;;  %v2334_v52 = vld [vmem:[%s4106_s13 + $0x28] sm:$0xff] }
 0x631   :  { %v1942_v49 = vrot.slane %v1941_v25, 1  ;;  %v1936_v58 = vadd.f32 %v1935_v45, %v1934_v57 }
 0x633   :  { %v1943_v61 = vadd.f32 %v1942_v49, %v1941_v25  ;;  %v1944_v27 = vmul.f32 0.5, %v1936_v58 }
 0x635   :  { %v1945_v26 = vmul.f32 0.5, %v1943_v61 }
 0x637   :  { %2010 = vmatprep.mubr.f32.mxu0 %v1945_v26 }
 0x638   :  { %2011 = vmatmul.mubr.f32.vlgmr.msra.gmra.mxu0 %v1944_v27 }
 0x639   :  { %3016 = vmatprep.mubr.msk.f32.mxu0 %vm3051_vm3, %v3049_v18  ;;  %2987 = vmatpush3.msra.mxu0 %v2343_v21 }
 0x63a   :  { %2988 = vmatprep.subr.mxu0 %v3049_v18 }
 0x63b   :  { %2989 = vmatpush3.msra.mxu0 %v2342_v6 }
 0x63c   :  { %2990 = vmatprep.subr.mxu0 %v3049_v18 }
 0x63d   :  { %2991 = vmatpush3.msra.mxu0 %v2341_v40 }
 0x63e   :  { %2992 = vmatprep.subr.mxu0 %v3049_v18 }
 0x63f   :  { %2993 = vmatpush3.msra.mxu0 %v2340_v41 }
 0x640   :  { %2994 = vmatprep.subr.mxu0 %v3049_v18 }
 0x641   :  { %2995 = vmatpush3.msra.mxu0 %v2339_v48 }
 0x642   :  { %2996 = vmatprep.subr.mxu0 %v3049_v18 }
 0x643   :  { %2997 = vmatpush3.msra.mxu0 %v2338_v23 }
 0x644   :  { %2998 = vmatprep.subr.mxu0 %v3049_v18 }
 0x645   :  { %2999 = vmatpush3.msra.mxu0 %v2337_v44 }
 0x646   :  { %3000 = vmatprep.subr.mxu0 %v3049_v18 }
 0x647   :  { %3001 = vmatpush3.msra.mxu0 %v2336_v43 }
 0x648   :  { %3002 = vmatprep.subr.mxu0 %v3049_v18 }
 0x649   :  { %3003 = vmatpush3.msra.mxu0 %v2335_v51 }
 0x64a   :  { %3004 = vmatprep.subr.mxu0 %v3049_v18 }
 0x64b   :  { %3005 = vmatpush3.msra.mxu0 %v2334_v52 }
 0x64c   :  { %3006 = vmatprep.subr.mxu0 %v3049_v18 }
 0x6f8   :  { %v2755_v47 = vpop.f32.mrf.mxu0 }
 0x6fa   :  { %v2756_v59 = vpop.f32.mrf.mxu0 }
 0x6fb   :  { %v2757_v63 = vadd.f32 %v2756_v59, %v2755_v47 }
 0x6fd   :  { %v2013_v1 = vadd.f32 1e-05, %v2757_v63 }
 0x6ff   :  { %3025 = vrsqrt.f32 %v2013_v1 }
 0x70c   :  { %v3026_v3 = vpop.eup %3025 }
 0x70d   :  { %v2018_v24 = vmul.f32 %v3026_v3, %v2017_v2 }
 0x70f   :  { %2595 = vmatmul.mubr.msk.f32.vlgmr.msra.gmra.mxu1 %vm1823_vm10, %v2018_v24  ;;  %v2333_v24 = vld [vmem:[%s4106_s13 + $0x20] sm:$0xff] }
 0x710   :  { %2126 = vmatpush1.msra.mxu1 %v1821_v34  ;;  %2161 = vmatprep.mubr.f32.mxu1 %v3049_v18  ;;  %v2213_v34 = vld [vmem:[%s4104_s11 + $0x28] sm:$0xff] }
 0x711   :  { %2127 = vmatprep.subr.mxu1 %v1820_v16  ;;  %v2228_v16 = vld [vmem:[%s4104_s11 + $0xa0] sm:$0xff]  ;;  %3007 = vmatpush3.msra.mxu0 %v2333_v24 }
 0x712   :  { %2128 = vmatpush1.msra.mxu1 %v1819_v35  ;;  %v2212_v35 = vld [vmem:[%s4104_s11 + $0x20] sm:$0xff]  ;;  %3008 = vmatprep.subr.mxu0 %v3049_v18 }
 0x713   :  { %2596 = vmatmul.mubr.msk.f32.vlgmr.msra.gmra.mxu1 %vm1823_vm10, %v2093_v62  ;;  %2758 = vmatprep.subr.mxu1 %v2239_v42  ;;  %v2329_v62 = vld [vmem:[%s4106_s13] sm:$0xff] }
 0x714   :  { %2759 = vmatpush3.msra.mxu1 %v2223_v12  ;;  %v2597_v12 = vld [vmem:[%s4105_s12] ss:$0 sm:$0xff] }
 0x715   :  { %2760 = vmatprep.subr.mxu1 %v2238_v15 }
 0x716   :  { %2761 = vmatpush3.msra.mxu1 %v2222_v22 }
 0x717   :  { %2762 = vmatprep.subr.mxu1 %v2237_v28 }
 0x718   :  { %2763 = vmatpush3.msra.mxu1 %v2221_v29 }
 0x719   :  { %2764 = vmatprep.subr.mxu1 %v2236_v50  ;;  %v2598_v50 = vld [vmem:[%s4107_s14] ss:$0 sm:$0xff] }
 0x71a   :  { %2765 = vmatpush3.msra.mxu1 %v2220_v4 }
 0x71b   :  { %2766 = vmatprep.subr.mxu1 %v2235_v5 }
 0x71c   :  { %2767 = vmatpush3.msra.mxu1 %v2219_v7 }
 0x71d   :  { %2768 = vmatprep.subr.mxu1 %v2234_v30 }
 0x71e   :  { %2769 = vmatpush3.msra.mxu1 %v2218_v31 }
 0x71f   :  { %2770 = vmatprep.subr.mxu1 %v2233_v8 }
 0x720   :  { %2771 = vmatpush3.msra.mxu1 %v2217_v9 }
 0x721   :  { %2772 = vmatprep.subr.mxu1 %v2232_v10 }
 0x722   :  { %2773 = vmatpush3.msra.mxu1 %v2216_v11 }
 0x723   :  { %2774 = vmatprep.subr.mxu1 %v2231_v13 }
 0x724   :  { %2775 = vmatpush3.msra.mxu1 %v2215_v14 }
 0x725   :  { %2776 = vmatprep.subr.mxu1 %v2230_v32 }
 0x726   :  { %2777 = vmatpush3.msra.mxu1 %v2214_v60 }
 0x727   :  { %2778 = vmatprep.subr.mxu1 %v2229_v33 }
 0x728   :  { %2779 = vmatpush3.msra.mxu1 %v2213_v34 }
 0x729   :  { %2780 = vmatprep.subr.mxu1 %v2228_v16 }
 0x72a   :  { %2781 = vmatpush3.msra.mxu1 %v2212_v35 }
 0x72b   :  { %2782 = vmatprep.subr.mxu1 %v2227_v36 }
 0x72c   :  { %2783 = vmatpush3.msra.mxu1 %v2211_v17 }
 0x72d   :  { %2784 = vmatprep.subr.mxu1 %v2226_v19 }
 0x72e   :  { %2785 = vmatpush3.msra.mxu1 %v2210_v37 }
 0x72f   :  { %2786 = vmatprep.subr.mxu1 %v2225_v46 }
 0x730   :  { %2787 = vmatpush3.msra.mxu1 %v2209_v38 }
 0x731   :  { %2788 = vmatprep.subr.mxu1 %v2224_v39 }
 0x732   :  { %2789 = vmatpush3.msra.mxu1 %v2208_v20 }
 0x7cf   :  { %v2088_v55 = vpop.f32.mrf.mxu1 }
 0x7d0   :  { %v2171_v57 = vrot.slane %v2088_v55, %v3437_v53 }
 0x7d1   :  { %v2090_v56 = vpop.f32.mrf.mxu1 }
 0x7d2   :  { %v2175_v25 = vrot.slane %v2090_v56, %v3437_v53 }
 0x7d3   :  { %v2163_v45 = vpop.f32.mrf.mxu1 }
 0x7d4   :  { %v2178_v49 = vcombine.low %v2171_v57, %v2175_v25  ;;  %v2191_v26 = vrot.slane %v2163_v45, %v3437_v53 }
 0x7d5   :  { %v2165_v58 = vpop.f32.mrf.mxu1 }
 0x7d6   :  { %v2185_v61 = vrot.slane %v2178_v49, %v3792_v54  ;;  %v2195_v27 = vrot.slane %v2165_v58, %v3437_v53  ;;  %v2332_v53 = vld [vmem:[%s4106_s13 + $0x18] sm:$0xff] }
 0x7d7   :  { %3009 = vmatpush3.msra.mxu0 %v2332_v53 }
 0x7d8   :  { %v2198_v47 = vcombine.low %v2191_v26, %v2195_v27  ;;  %v2187_v59 = vmul.f32 %v2185_v61, %v3903_v0  ;;  %3010 = vmatprep.subr.mxu0 %v3049_v18  ;;  %v2330_v0 = vld [vmem:[%s4106_s13 + $0x8] sm:$0xff] }
 0x7da   :  { %v2205_v63 = vrot.slane %v2198_v47, %v3792_v54 }
 0x7dc   :  { %v2207_v1 = vadd.f32 %v2205_v63, %v2187_v59 }
 0x7de   :  { %v2254_v2 = vrot.slane %v2207_v1, %v3792_v54  ;;  %v2331_v54 = vld [vmem:[%s4106_s13 + $0x10] sm:$0xff]  ;;  %s3054_s13 = smov [#allocation7]  }
 0x7df   :  { %3011 = vmatpush3.msra.mxu0 %v2331_v54  ;;  %s2434_s21 = sshll.u32 %s3054_s13, 4  ;;  %s2435_s21 = int_to_ptr.vmem [resolvable:$true] %s2434_s21 }
 0x7e0   :  { %v2255_v3 = vcombine.high %v2254_v2, %v2254_v2  ;;  %3012 = vmatprep.subr.mxu0 %v3049_v18  ;;  %s3027_s12 = scalar_lea.vmem %s2435_s21, 32  ;;  %p3032_p1 = scmp.lt.s32.totalorder %s2435_s21, %s2435_s21 }
 0x7e1   :  { %3013 = vmatpush3.msra.mxu0 %v2330_v0  ;;  %p3028_p0 = scmp.ne.s32.totalorder %s2435_s21, %s3027_s12  ;;  %p3033_p2 = scmp.lt.s32.totalorder %s3027_s12, %s3027_s12 }
 0x7e2   :  { %2322 = vmatprep.mubr.f32.mxu1 %v2255_v3  ;;  %3014 = vmatprep.subr.mxu0 %v3049_v18 }
 0x7e3   :  { %2323 = vmatmul.mubr.f32.vlgmr.msra.gmra.mxu1 %v2254_v2  ;;  %3015 = vmatpush3.msra.mxu0 %v2329_v62  ;;  %p3034_p3 = por %p3033_p2, %p3032_p1 }
 0x7e5   :  { %p3035_p4 = pnand %p3034_p3, %p3028_p0 }
 0x8a3   :  { %v2790_v42 = vpop.f32.mrf.mxu1 }
 0x8a5   :  { %v2791_v15 = vpop.f32.mrf.mxu1 }
 0x8a6   :  { %v2792_v22 = vadd.f32 %v2791_v15, %v2790_v42 }
 0x8a8   :  { %v2325_v28 = vadd.f32 %v2792_v22, %v2597_v12 }
 0x8aa   :  { %v2328_v29 = vmax.f32 %v2325_v28, 0.0 }
 0x8ac   :  { %3017 = vmatmul.mubr.msk.f32.vlgmr.msra.gmra.mxu0 %vm2351_vm11, %v2328_v29 }
 0x96c   :  { %v2421_v4 = vpop.f32.mrf.mxu0 }
 0x96d   :  { %v2422_v18 = vadd.f32 %v2598_v50, %v2421_v4 }
 0x96e   :  { %v3018_v5 = vpop.f32.mrf.mxu0 }
 0x96f   :  { %v2425_v7 = vmax.f32 %v2422_v18, 0.0 }
 0x971   :  { %2427 = vst.msk [vmem:[#allocation7] sm:$0x3] %vm2426_vm12, %v2425_v7 }
 0x972   :  { %3038 = shalt.err (!%p3035_p4)
}
 0x973   :  { %2437 = dma.vmem_to_hbm [thread:$0]  %s2435_s21, 32, %s4108_s15, [#allocation8]  }
 0x974   :  { %3047 = dma.done.wait [#allocation8], 32  }
 0x975   :  { %3048 = vsyncadd [#allocation8], 4294967264 }
 0x976   :  { %2441 = vsyncpa [#allocation8], 1 }

</bundles_post_ra>
